<compile_context>
chip_gen: v5e
topology: v5e:2x2
jax: 0.10.0
libtpu: 0.0.40
codegen_flags: <defaults>
</compile_context>

<pallas_src>
import functools
import math

import jax
import jax.numpy as jnp
from jax import lax
from jax.experimental import pallas as pl
from jax.experimental.pallas import tpu as pltpu


EPS = 1e-12                      # DeepSpeedInferenceConfig default epsilon
MXU_DTYPE = jnp.bfloat16         # MXU operand dtype (f32 accumulation)
VMEM_LIMIT = 64 * 1024 * 1024    # explicit scoped-VMEM budget (fits v7x)


def _gelu(x):
    # DeepSpeed inference uses the tanh approximation of GELU.
    c = 0.7978845608028654
    return 0.5 * x * (1.0 + jnp.tanh(c * (x + 0.044715 * x * x * x)))


def _tile(dim, target, align):
    """Largest tile <= target that divides `dim` and is a multiple of `align`;
    falls back to the full dim (full-extent blocks are always legal)."""
    if dim <= target:
        return dim
    t = (min(dim, target) // align) * align
    while t >= align:
        if dim % t == 0:
            return t
        t -= align
    return dim


# --------------------------------------------------------------------------
# LayerNorm (row tiled)
# --------------------------------------------------------------------------
def _ln_kernel(x_ref, g_ref, b_ref, o_ref, *, eps):
    x = x_ref[...]
    mu = jnp.mean(x, axis=-1, keepdims=True)
    var = jnp.mean(jnp.square(x - mu), axis=-1, keepdims=True)
    o_ref[...] = ((x - mu) * lax.rsqrt(var + eps) * g_ref[...]
                  + b_ref[...]).astype(o_ref.dtype)


def layer_norm(x, gamma, beta, *, eps=EPS, row_tile=512):
    M, H = x.shape
    tr = _tile(M, row_tile, 8)
    return pl.pallas_call(
        functools.partial(_ln_kernel, eps=eps),
        out_shape=jax.ShapeDtypeStruct((M, H), jnp.float32),
        grid=(M // tr,),
        in_specs=[pl.BlockSpec((tr, H), lambda i: (i, 0)),
                  pl.BlockSpec((1, H), lambda i: (0, 0)),
                  pl.BlockSpec((1, H), lambda i: (0, 0))],
        out_specs=pl.BlockSpec((tr, H), lambda i: (i, 0)),
        compiler_params=pltpu.CompilerParams(
            dimension_semantics=("parallel",),
            vmem_limit_bytes=VMEM_LIMIT),
    )(x, gamma, beta)


# --------------------------------------------------------------------------
# Tiled GEMM with fused bias / residual / gelu in the finalize step
# --------------------------------------------------------------------------
def _gemm_kernel(a_ref, w_ref, b_ref, *rest, activation, has_residual):
    if has_residual:
        r_ref, o_ref, acc_ref = rest
    else:
        o_ref, acc_ref = rest

    k = pl.program_id(2)

    @pl.when(k == 0)
    def _init():
        acc_ref[...] = jnp.zeros_like(acc_ref)

    acc_ref[...] += jnp.dot(a_ref[...].astype(MXU_DTYPE),
                            w_ref[...].astype(MXU_DTYPE),
                            preferred_element_type=jnp.float32)

    @pl.when(k == pl.num_programs(2) - 1)
    def _finalize():
        out = acc_ref[...] + b_ref[...]          # bias hoisted out of the K loop
        if has_residual:
            out = out + r_ref[...]
        if activation == "gelu":
            out = _gelu(out)
        o_ref[...] = out.astype(o_ref.dtype)


def gemm(a, w, bias, *, residual=None, activation=None,
         tm=256, tn=256, tk=512):
    M, K = a.shape
    _, N = w.shape
    tm = _tile(M, tm, 8)
    tn = _tile(N, tn, 128)
    tk = _tile(K, tk, 128)

    in_specs = [pl.BlockSpec((tm, tk), lambda i, j, k: (i, k)),
                pl.BlockSpec((tk, tn), lambda i, j, k: (k, j)),
                pl.BlockSpec((1, tn), lambda i, j, k: (0, j))]
    args = [a, w, bias]
    if residual is not None:
        in_specs.append(pl.BlockSpec((tm, tn), lambda i, j, k: (i, j)))
        args.append(residual)

    return pl.pallas_call(
        functools.partial(_gemm_kernel, activation=activation,
                          has_residual=residual is not None),
        out_shape=jax.ShapeDtypeStruct((M, N), jnp.float32),
        grid=(M // tm, N // tn, K // tk),
        in_specs=in_specs,
        out_specs=pl.BlockSpec((tm, tn), lambda i, j, k: (i, j)),
        scratch_shapes=[pltpu.VMEM((tm, tn), jnp.float32)],
        compiler_params=pltpu.CompilerParams(
            dimension_semantics=("parallel", "parallel", "arbitrary"),
            vmem_limit_bytes=VMEM_LIMIT),
    )(*args)


# --------------------------------------------------------------------------
# Heads-batched causal flash attention (online softmax over KV tiles)
# --------------------------------------------------------------------------
def _attn_kernel(q_ref, k_ref, v_ref, o_ref, m_sc, l_sc, acc_sc,
                 *, scale, tq, tk):
    ki = pl.program_id(2)

    @pl.when(ki == 0)
    def _init():
        m_sc[...] = jnp.full_like(m_sc, -jnp.inf)
        l_sc[...] = jnp.zeros_like(l_sc)
        acc_sc[...] = jnp.zeros_like(acc_sc)

    q_start = pl.program_id(1) * tq
    k_start = ki * tk

    # Skip fully-masked (strictly upper triangular) KV tiles entirely.
    @pl.when(k_start < q_start + tq)
    def _compute():
        # Fold 1/sqrt(hd) into q (S x hd work instead of S x S).
        q = (q_ref[0] * scale).astype(MXU_DTYPE)        # (heads, tq, hd)
        kk = k_ref[0].astype(MXU_DTYPE)                 # (heads, tk, hd)
        s = lax.dot_general(q, kk, (((2,), (2,)), ((0,), (0,))),
                            preferred_element_type=jnp.float32)  # (heads, tq, tk)

        rows = q_start + lax.broadcasted_iota(jnp.int32, (1, tq, tk), 1)
        cols = k_start + lax.broadcasted_iota(jnp.int32, (1, tq, tk), 2)
        s = jnp.where(cols <= rows, s, jnp.float32(-1e30))

        m_prev = m_sc[...]
        m_new = jnp.maximum(m_prev, jnp.max(s, axis=-1, keepdims=True))
        alpha = jnp.exp(m_prev - m_new)
        p = jnp.exp(s - m_new)
        l_sc[...] = alpha * l_sc[...] + jnp.sum(p, axis=-1, keepdims=True)
        acc_sc[...] = alpha * acc_sc[...] + lax.dot_general(
            p.astype(MXU_DTYPE), v_ref[0].astype(MXU_DTYPE),
            (((2,), (1,)), ((0,), (0,))),
            preferred_element_type=jnp.float32)
        m_sc[...] = m_new

    @pl.when(ki == pl.num_programs(2) - 1)
    def _finalize():
        o_ref[0] = (acc_sc[...] * pl.reciprocal(l_sc[...], approx=True)
                    ).astype(o_ref.dtype)


def flash_attention(q, k, v, *, tq=128, tk=128):
    B, heads, S, hd = q.shape
    tq = _tile(S, tq, 8)
    tk = _tile(S, tk, 8)
    scale = 1.0 / math.sqrt(hd)

    q_spec = pl.BlockSpec((1, heads, tq, hd), lambda b, qi, ki: (b, 0, qi, 0))
    kv_spec = pl.BlockSpec((1, heads, tk, hd), lambda b, qi, ki: (b, 0, ki, 0))

    return pl.pallas_call(
        functools.partial(_attn_kernel, scale=scale, tq=tq, tk=tk),
        out_shape=jax.ShapeDtypeStruct((B, heads, S, hd), jnp.float32),
        grid=(B, S // tq, S // tk),
        in_specs=[q_spec, kv_spec, kv_spec],
        out_specs=q_spec,
        scratch_shapes=[pltpu.VMEM((heads, tq, 1), jnp.float32),
                        pltpu.VMEM((heads, tq, 1), jnp.float32),
                        pltpu.VMEM((heads, tq, hd), jnp.float32)],
        compiler_params=pltpu.CompilerParams(
            dimension_semantics=("parallel", "parallel", "arbitrary"),
            vmem_limit_bytes=VMEM_LIMIT),
    )(q, k, v)


# --------------------------------------------------------------------------
# Full transformer-inference layer
# --------------------------------------------------------------------------
def deepspeed_transformer_inference(x, params, *, heads, eps=EPS):
    B, S, H = x.shape
    hd = H // heads
    x2 = x.reshape(B * S, H).astype(jnp.float32)

    # Pre-cast weights to bf16 once: halves weight DMA / VMEM; the MXU runs
    # bf16 with f32 accumulation either way.
    qkvw = params["attn_qkvw"].astype(MXU_DTYPE)
    attn_ow = params["attn_ow"].astype(MXU_DTYPE)
    inter_w = params["inter_w"].astype(MXU_DTYPE)
    output_w = params["output_w"].astype(MXU_DTYPE)

    # ---- attention block (pre layer norm) ----
    inp_norm = layer_norm(x2, params["norm_w"], params["norm_b"], eps=eps)
    qkv = gemm(inp_norm, qkvw, params["attn_qkvb"])                 # (BS, 3H)

    qkv4 = qkv.reshape(B, S, 3, heads, hd)
    q = qkv4[:, :, 0].transpose(0, 2, 1, 3)                         # (B, h, S, hd)
    k = qkv4[:, :, 1].transpose(0, 2, 1, 3)
    v = qkv4[:, :, 2].transpose(0, 2, 1, 3)
    ctx = flash_attention(q, k, v)                                  # (B, h, S, hd)
    context = ctx.transpose(0, 2, 1, 3).reshape(B * S, H)

    # r1 = x + context @ attn_ow + attn_ob   (residual + attn bias fused)
    r1 = gemm(context, attn_ow, params["attn_ob"], residual=x2)

    # ---- MLP block ----
    ln2 = layer_norm(r1, params["attn_nw"], params["attn_nb"], eps=eps)
    inter = gemm(ln2, inter_w, params["inter_b"], activation="gelu")
    # out = r1 + inter @ output_w + output_b (residual_add, preln, mp_size=1)
    out = gemm(inter, output_w, params["output_b"], residual=r1)

    return out.reshape(B, S, H).astype(x.dtype)


# --------------------------------------------------------------------------
# Pure-JAX reference of the same forward pass (for sanity checking)
# --------------------------------------------------------------------------
def _layer_norm_ref(x, gamma, beta, eps):
    mu = jnp.mean(x, axis=-1, keepdims=True)
    var = jnp.mean(jnp.square(x - mu), axis=-1, keepdims=True)
    return (x - mu) * lax.rsqrt(var + eps) * gamma + beta


def reference_forward(x, p, *, heads, eps=EPS):
    B, S, H = x.shape
    hd = H // heads
    xn = _layer_norm_ref(x, p["norm_w"], p["norm_b"], eps)
    qkv = xn @ p["attn_qkvw"] + p["attn_qkvb"]
    q, k, v = jnp.split(qkv, 3, axis=-1)
    q = q.reshape(B, S, heads, hd).transpose(0, 2, 1, 3)
    k = k.reshape(B, S, heads, hd).transpose(0, 2, 1, 3)
    v = v.reshape(B, S, heads, hd).transpose(0, 2, 1, 3)
    scores = jnp.einsum("bhqd,bhkd->bhqk", q, k) / math.sqrt(hd)
    causal = jnp.tril(jnp.ones((S, S), bool))
    scores = jnp.where(causal, scores, -1e30)
    probs = jax.nn.softmax(scores, axis=-1)
    ctx = jnp.einsum("bhqk,bhkd->bhqd", probs, v)
    ctx = ctx.transpose(0, 2, 1, 3).reshape(B, S, H)
    attn_out = ctx @ p["attn_ow"]
    r1 = x + attn_out + p["attn_ob"]
    ln2 = _layer_norm_ref(r1, p["attn_nw"], p["attn_nb"], eps)
    inter = _gelu(ln2 @ p["inter_w"] + p["inter_b"])
    mlp_out = inter @ p["output_w"]
    return r1 + mlp_out + p["output_b"]


def make_params(key, hidden, intermediate):
    ks = jax.random.split(key, 6)
    scale = 0.1
    f32 = jnp.float32
    return {
        "norm_w":    jnp.ones((1, hidden), f32),
        "norm_b":    jnp.zeros((1, hidden), f32),
        "attn_qkvw": scale * jax.random.normal(ks[0], (hidden, 3 * hidden), f32),
        "attn_qkvb": scale * jax.random.normal(ks[1], (1, 3 * hidden), f32),
        "attn_ow":   scale * jax.random.normal(ks[2], (hidden, hidden), f32),
        "attn_ob":   jnp.zeros((1, hidden), f32),
        "attn_nw":   jnp.ones((1, hidden), f32),
        "attn_nb":   jnp.zeros((1, hidden), f32),
        "inter_w":   scale * jax.random.normal(ks[3], (hidden, intermediate), f32),
        "inter_b":   scale * jax.random.normal(ks[4], (1, intermediate), f32),
        "output_w":  scale * jax.random.normal(ks[5], (intermediate, hidden), f32),
        "output_b":  jnp.zeros((1, hidden), f32),
    }


if __name__ == "__main__":
    B, S, H, HEADS = 2, 8, 32, 4
    INTERMEDIATE = 4 * H

    key = jax.random.PRNGKey(0)
    k_x, k_p = jax.random.split(key)
    x = jax.random.normal(k_x, (B, S, H), jnp.float32)
    params = make_params(k_p, H, INTERMEDIATE)

    fwd = jax.jit(functools.partial(deepspeed_transformer_inference, heads=HEADS))
    out = jax.block_until_ready(fwd(x, params))

    ref = reference_forward(x, params, heads=HEADS)
    assert out.shape == (B, S, H) and out.dtype == jnp.float32
    max_err = float(jnp.max(jnp.abs(out - ref)))
    # bf16 MXU operands + approx reciprocal -> slightly looser tolerance than f32.
    assert jnp.allclose(out, ref, atol=5e-2, rtol=5e-2), max_err

    print("KERNEL_OK")
</pallas_src>

<mosaic_0001>
module attributes {stable_mosaic.version = 11 : i64} {
  func.func @_ln_kernel(%arg0: i32, %arg1: memref<16x32xf32, #tpu.memory_space<vmem>>, %arg2: memref<1x32xf32, #tpu.memory_space<vmem>>, %arg3: memref<1x32xf32, #tpu.memory_space<vmem>>, %arg4: memref<16x32xf32, #tpu.memory_space<vmem>>) attributes {dimension_semantics = [#tpu.dimension_semantics<parallel>], iteration_bounds = array<i64: 1>, scalar_prefetch = 0 : i64, scratch_operands = 0 : i64, tpu.core_type = #tpu.core_type<tc>, window_params = [{transform_indices = @transform_0, window_bounds = array<i64: 16, 32>}, {pipeline_mode = #tpu.pipeline_mode<synchronous>, transform_indices = @transform_1, window_bounds = array<i64: 1, 32>}, {pipeline_mode = #tpu.pipeline_mode<synchronous>, transform_indices = @transform_2, window_bounds = array<i64: 1, 32>}, {transform_indices = @transform_3, window_bounds = array<i64: 16, 32>}]} {
    %c0 = arith.constant 0 : index
    %c0_0 = arith.constant 0 : index
    %0 = vector.load %arg1[%c0, %c0_0] : memref<16x32xf32, #tpu.memory_space<vmem>>, vector<16x32xf32>
    %cst = arith.constant dense<0.000000e+00> : vector<16xf32>
    %1 = vector.multi_reduction <add>, %0, %cst [1] : vector<16x32xf32> to vector<16xf32>
    %2 = vector.shape_cast %1 : vector<16xf32> to vector<16x1xf32>
    %cst_1 = arith.constant 3.200000e+01 : f32
    %3 = vector.broadcast %cst_1 : f32 to vector<16x1xf32>
    %4 = arith.divf %2, %3 : vector<16x1xf32>
    %5 = vector.broadcast %4 : vector<16x1xf32> to vector<16x32xf32>
    %6 = arith.subf %0, %5 : vector<16x32xf32>
    %7 = arith.mulf %6, %6 : vector<16x32xf32>
    %cst_2 = arith.constant dense<0.000000e+00> : vector<16xf32>
    %8 = vector.multi_reduction <add>, %7, %cst_2 [1] : vector<16x32xf32> to vector<16xf32>
    %9 = vector.shape_cast %8 : vector<16xf32> to vector<16x1xf32>
    %cst_3 = arith.constant 3.200000e+01 : f32
    %10 = vector.broadcast %cst_3 : f32 to vector<16x1xf32>
    %11 = arith.divf %9, %10 : vector<16x1xf32>
    %12 = vector.broadcast %4 : vector<16x1xf32> to vector<16x32xf32>
    %13 = arith.subf %0, %12 : vector<16x32xf32>
    %cst_4 = arith.constant 9.99999996E-13 : f32
    %14 = vector.broadcast %cst_4 : f32 to vector<16x1xf32>
    %15 = arith.addf %11, %14 : vector<16x1xf32>
    %16 = math.rsqrt %15 : vector<16x1xf32>
    %17 = vector.broadcast %16 : vector<16x1xf32> to vector<16x32xf32>
    %18 = arith.mulf %13, %17 : vector<16x32xf32>
    %c0_5 = arith.constant 0 : index
    %c0_6 = arith.constant 0 : index
    %19 = vector.load %arg2[%c0_5, %c0_6] : memref<1x32xf32, #tpu.memory_space<vmem>>, vector<1x32xf32>
    %20 = vector.broadcast %19 : vector<1x32xf32> to vector<16x32xf32>
    %21 = arith.mulf %18, %20 : vector<16x32xf32>
    %c0_7 = arith.constant 0 : index
    %c0_8 = arith.constant 0 : index
    %22 = vector.load %arg3[%c0_7, %c0_8] : memref<1x32xf32, #tpu.memory_space<vmem>>, vector<1x32xf32>
    %23 = vector.broadcast %22 : vector<1x32xf32> to vector<16x32xf32>
    %24 = arith.addf %21, %23 : vector<16x32xf32>
    %c0_9 = arith.constant 0 : index
    %c0_10 = arith.constant 0 : index
    %25 = vector.load %arg4[%c0_9, %c0_10] : memref<16x32xf32, #tpu.memory_space<vmem>>, vector<16x32xf32>
    tpu.vector_store %arg4[%c0_9, %c0_10], %24 {strides = array<i32>} : memref<16x32xf32, #tpu.memory_space<vmem>>, vector<16x32xf32>,
    return
  }
  func.func @transform_0(%arg0: i32) -> (i32, i32) {
    %c0_i32 = arith.constant 0 : i32
    %c0_i32_0 = arith.constant 0 : i32
    return %arg0, %c0_i32 : i32, i32
  }
  func.func @transform_1(%arg0: i32) -> (i32, i32) {
    %c0_i32 = arith.constant 0 : i32
    %c0_i32_0 = arith.constant 0 : i32
    %c0_i32_1 = arith.constant 0 : i32
    return %c0_i32, %c0_i32_0 : i32, i32
  }
  func.func @transform_2(%arg0: i32) -> (i32, i32) {
    %c0_i32 = arith.constant 0 : i32
    %c0_i32_0 = arith.constant 0 : i32
    %c0_i32_1 = arith.constant 0 : i32
    return %c0_i32, %c0_i32_0 : i32, i32
  }
  func.func @transform_3(%arg0: i32) -> (i32, i32) {
    %c0_i32 = arith.constant 0 : i32
    %c0_i32_0 = arith.constant 0 : i32
    return %arg0, %c0_i32 : i32, i32
  }
}

module attributes {stable_mosaic.version = 11 : i64} {
  func.func @_gemm_kernel(%arg0: i32, %arg1: i32, %arg2: i32, %arg3: memref<16x32xf32, #tpu.memory_space<vmem>>, %arg4: memref<32x96xbf16, #tpu.memory_space<vmem>>, %arg5: memref<1x96xf32, #tpu.memory_space<vmem>>, %arg6: memref<16x96xf32, #tpu.memory_space<vmem>>, %arg7: memref<16x96xf32, #tpu.memory_space<vmem>>) attributes {dimension_semantics = [#tpu.dimension_semantics<parallel>, #tpu.dimension_semantics<parallel>, #tpu.dimension_semantics<arbitrary>], iteration_bounds = array<i64: 1, 1, 1>, scalar_prefetch = 0 : i64, scratch_operands = 1 : i64, tpu.core_type = #tpu.core_type<tc>, window_params = [{transform_indices = @transform_0, window_bounds = array<i64: 16, 32>}, {transform_indices = @transform_1, window_bounds = array<i64: 32, 96>}, {transform_indices = @transform_2, window_bounds = array<i64: 1, 96>}, {transform_indices = @transform_3, window_bounds = array<i64: 16, 96>}]} {
    %c0_i32 = arith.constant 0 : i32
    %0 = arith.cmpi eq, %arg2, %c0_i32 : i32
    %1 = arith.extui %0 : i1 to i32
    %c0_i32_0 = arith.constant 0 : i32
    %2 = arith.cmpi ne, %1, %c0_i32_0 : i32
    scf.if %2 {
      %cst_10 = arith.constant 0.000000e+00 : f32
      %13 = vector.broadcast %cst_10 : f32 to vector<16x96xf32>
      %c0_11 = arith.constant 0 : index
      %c0_12 = arith.constant 0 : index
      %14 = vector.load %arg7[%c0_11, %c0_12] : memref<16x96xf32, #tpu.memory_space<vmem>>, vector<16x96xf32>
      tpu.vector_store %arg7[%c0_11, %c0_12], %13 {strides = array<i32>} : memref<16x96xf32, #tpu.memory_space<vmem>>, vector<16x96xf32>,
    } else {
    }
    %c0 = arith.constant 0 : index
    %c0_1 = arith.constant 0 : index
    %3 = vector.load %arg7[%c0, %c0_1] : memref<16x96xf32, #tpu.memory_space<vmem>>, vector<16x96xf32>
    %c0_2 = arith.constant 0 : index
    %c0_3 = arith.constant 0 : index
    %4 = vector.load %arg3[%c0_2, %c0_3] : memref<16x32xf32, #tpu.memory_space<vmem>>, vector<16x32xf32>
    %5 = arith.truncf %4 : vector<16x32xf32> to vector<16x32xbf16>
    %c0_4 = arith.constant 0 : index
    %c0_5 = arith.constant 0 : index
    %6 = vector.load %arg4[%c0_4, %c0_5] : memref<32x96xbf16, #tpu.memory_space<vmem>>, vector<32x96xbf16>
    %cst = arith.constant dense<0.000000e+00> : vector<16x96xf32>
    %7 = tpu.matmul %5, %6, %cst {dimension_numbers = #tpu.dot_dimension_numbers<[1], [0], [0], [1], [0, 0, 1, 1], [], []>} : vector<16x32xbf16>, vector<32x96xbf16>, vector<16x96xf32> -> vector<16x96xf32>
    %8 = arith.addf %3, %7 : vector<16x96xf32>
    %c0_6 = arith.constant 0 : index
    %c0_7 = arith.constant 0 : index
    %9 = vector.load %arg7[%c0_6, %c0_7] : memref<16x96xf32, #tpu.memory_space<vmem>>, vector<16x96xf32>
    tpu.vector_store %arg7[%c0_6, %c0_7], %8 {strides = array<i32>} : memref<16x96xf32, #tpu.memory_space<vmem>>, vector<16x96xf32>,
    %c0_i32_8 = arith.constant 0 : i32
    %10 = arith.cmpi eq, %arg2, %c0_i32_8 : i32
    %11 = arith.extui %10 : i1 to i32
    %c0_i32_9 = arith.constant 0 : i32
    %12 = arith.cmpi ne, %11, %c0_i32_9 : i32
    scf.if %12 {
      %c0_10 = arith.constant 0 : index
      %c0_11 = arith.constant 0 : index
      %13 = vector.load %arg7[%c0_10, %c0_11] : memref<16x96xf32, #tpu.memory_space<vmem>>, vector<16x96xf32>
      %c0_12 = arith.constant 0 : index
      %c0_13 = arith.constant 0 : index
      %14 = vector.load %arg5[%c0_12, %c0_13] : memref<1x96xf32, #tpu.memory_space<vmem>>, vector<1x96xf32>
      %15 = vector.broadcast %14 : vector<1x96xf32> to vector<16x96xf32>
      %16 = arith.addf %13, %15 : vector<16x96xf32>
      %c0_14 = arith.constant 0 : index
      %c0_15 = arith.constant 0 : index
      %17 = vector.load %arg6[%c0_14, %c0_15] : memref<16x96xf32, #tpu.memory_space<vmem>>, vector<16x96xf32>
      tpu.vector_store %arg6[%c0_14, %c0_15], %16 {strides = array<i32>} : memref<16x96xf32, #tpu.memory_space<vmem>>, vector<16x96xf32>,
    } else {
    }
    return
  }
  func.func @transform_0(%arg0: i32, %arg1: i32, %arg2: i32) -> (i32, i32) {
    %c0_i32 = arith.constant 0 : i32
    return %arg0, %arg2 : i32, i32
  }
  func.func @transform_1(%arg0: i32, %arg1: i32, %arg2: i32) -> (i32, i32) {
    %c0_i32 = arith.constant 0 : i32
    return %arg2, %arg1 : i32, i32
  }
  func.func @transform_2(%arg0: i32, %arg1: i32, %arg2: i32) -> (i32, i32) {
    %c0_i32 = arith.constant 0 : i32
    %c0_i32_0 = arith.constant 0 : i32
    return %c0_i32, %arg1 : i32, i32
  }
  func.func @transform_3(%arg0: i32, %arg1: i32, %arg2: i32) -> (i32, i32) {
    %c0_i32 = arith.constant 0 : i32
    return %arg0, %arg1 : i32, i32
  }
}

module attributes {stable_mosaic.version = 11 : i64} {
  func.func @_attn_kernel(%arg0: i32, %arg1: i32, %arg2: i32, %arg3: memref<1x4x8x8xf32, #tpu.memory_space<vmem>>, %arg4: memref<1x4x8x8xf32, #tpu.memory_space<vmem>>, %arg5: memref<1x4x8x8xf32, #tpu.memory_space<vmem>>, %arg6: memref<1x4x8x8xf32, #tpu.memory_space<vmem>>, %arg7: memref<4x8x1xf32, #tpu.memory_space<vmem>>, %arg8: memref<4x8x1xf32, #tpu.memory_space<vmem>>, %arg9: memref<4x8x8xf32, #tpu.memory_space<vmem>>) attributes {dimension_semantics = [#tpu.dimension_semantics<parallel>, #tpu.dimension_semantics<parallel>, #tpu.dimension_semantics<arbitrary>], iteration_bounds = array<i64: 2, 1, 1>, scalar_prefetch = 0 : i64, scratch_operands = 3 : i64, tpu.core_type = #tpu.core_type<tc>, window_params = [{transform_indices = @transform_0, window_bounds = array<i64: 1, 4, 8, 8>}, {transform_indices = @transform_1, window_bounds = array<i64: 1, 4, 8, 8>}, {transform_indices = @transform_2, window_bounds = array<i64: 1, 4, 8, 8>}, {transform_indices = @transform_3, window_bounds = array<i64: 1, 4, 8, 8>}]} {
    %c0_i32 = arith.constant 0 : i32
    %0 = arith.cmpi eq, %arg2, %c0_i32 : i32
    %1 = arith.extui %0 : i1 to i32
    %c0_i32_0 = arith.constant 0 : i32
    %2 = arith.cmpi ne, %1, %c0_i32_0 : i32
    scf.if %2 {
      %cst = arith.constant 0xFF800000 : f32
      %12 = vector.broadcast %cst : f32 to vector<4x8x1xf32>
      %c0 = arith.constant 0 : index
      %c0_6 = arith.constant 0 : index
      %c0_7 = arith.constant 0 : index
      %13 = vector.load %arg7[%c0, %c0_6, %c0_7] : memref<4x8x1xf32, #tpu.memory_space<vmem>>, vector<4x8x1xf32>
      tpu.vector_store %arg7[%c0, %c0_6, %c0_7], %12 {strides = array<i32>} : memref<4x8x1xf32, #tpu.memory_space<vmem>>, vector<4x8x1xf32>,
      %cst_8 = arith.constant 0.000000e+00 : f32
      %14 = vector.broadcast %cst_8 : f32 to vector<4x8x1xf32>
      %c0_9 = arith.constant 0 : index
      %c0_10 = arith.constant 0 : index
      %c0_11 = arith.constant 0 : index
      %15 = vector.load %arg8[%c0_9, %c0_10, %c0_11] : memref<4x8x1xf32, #tpu.memory_space<vmem>>, vector<4x8x1xf32>
      tpu.vector_store %arg8[%c0_9, %c0_10, %c0_11], %14 {strides = array<i32>} : memref<4x8x1xf32, #tpu.memory_space<vmem>>, vector<4x8x1xf32>,
      %cst_12 = arith.constant 0.000000e+00 : f32
      %16 = vector.broadcast %cst_12 : f32 to vector<4x8x8xf32>
      %c0_13 = arith.constant 0 : index
      %c0_14 = arith.constant 0 : index
      %c0_15 = arith.constant 0 : index
      %17 = vector.load %arg9[%c0_13, %c0_14, %c0_15] : memref<4x8x8xf32, #tpu.memory_space<vmem>>, vector<4x8x8xf32>
      tpu.vector_store %arg9[%c0_13, %c0_14, %c0_15], %16 {strides = array<i32>} : memref<4x8x8xf32, #tpu.memory_space<vmem>>, vector<4x8x8xf32>,
    } else {
    }
    %c8_i32 = arith.constant 8 : i32
    %3 = arith.muli %arg1, %c8_i32 : i32
    %c8_i32_1 = arith.constant 8 : i32
    %4 = arith.muli %arg2, %c8_i32_1 : i32
    %c8_i32_2 = arith.constant 8 : i32
    %5 = arith.addi %3, %c8_i32_2 : i32
    %6 = arith.cmpi slt, %4, %5 : i32
    %7 = arith.extui %6 : i1 to i32
    %c0_i32_3 = arith.constant 0 : i32
    %8 = arith.cmpi ne, %7, %c0_i32_3 : i32
    scf.if %8 {
      %c0 = arith.constant 0 : index
      %c0_6 = arith.constant 0 : index
      %c0_7 = arith.constant 0 : index
      %c0_8 = arith.constant 0 : index
      %12 = vector.load %arg3[%c0, %c0_6, %c0_7, %c0_8] : memref<1x4x8x8xf32, #tpu.memory_space<vmem>>, vector<1x4x8x8xf32>
      %13 = vector.shape_cast %12 : vector<1x4x8x8xf32> to vector<4x8x8xf32>
      %cst = arith.constant 0.353553385 : f32
      %14 = vector.broadcast %cst : f32 to vector<4x8x8xf32>
      %15 = arith.mulf %13, %14 : vector<4x8x8xf32>
      %16 = arith.truncf %15 : vector<4x8x8xf32> to vector<4x8x8xbf16>
      %c0_9 = arith.constant 0 : index
      %c0_10 = arith.constant 0 : index
      %c0_11 = arith.constant 0 : index
      %c0_12 = arith.constant 0 : index
      %17 = vector.load %arg4[%c0_9, %c0_10, %c0_11, %c0_12] : memref<1x4x8x8xf32, #tpu.memory_space<vmem>>, vector<1x4x8x8xf32>
      %18 = vector.shape_cast %17 : vector<1x4x8x8xf32> to vector<4x8x8xf32>
      %19 = arith.truncf %18 : vector<4x8x8xf32> to vector<4x8x8xbf16>
      %cst_13 = arith.constant dense<0.000000e+00> : vector<4x8x8xf32>
      %20 = tpu.matmul %16, %19, %cst_13 {dimension_numbers = #tpu.dot_dimension_numbers<[2], [2], [1], [1], [0, 0, 0, 1, 1, 1], [0], [0]>} : vector<4x8x8xbf16>, vector<4x8x8xbf16>, vector<4x8x8xf32> -> vector<4x8x8xf32>
      %21 = tpu.iota {dimensions = array<i32: 1>} : vector<1x8x8xi32>
      %22 = vector.broadcast %3 : i32 to vector<1x8x8xi32>
      %23 = arith.addi %22, %21 : vector<1x8x8xi32>
      %24 = tpu.iota {dimensions = array<i32: 2>} : vector<1x8x8xi32>
      %25 = vector.broadcast %4 : i32 to vector<1x8x8xi32>
      %26 = arith.addi %25, %24 : vector<1x8x8xi32>
      %27 = arith.cmpi sle, %26, %23 : vector<1x8x8xi32>
      %cst_14 = arith.constant -1.000000e+30 : f32
      %28 = vector.shape_cast %27 : vector<1x8x8xi1> to vector<1x8x8xi1>
      %29 = vector.broadcast %28 : vector<1x8x8xi1> to vector<4x8x8xi1>
      %30 = vector.broadcast %cst_14 : f32 to vector<4x8x8xf32>
      %31 = arith.select %29, %20, %30 : vector<4x8x8xi1>, vector<4x8x8xf32>
      %c0_15 = arith.constant 0 : index
      %c0_16 = arith.constant 0 : index
      %c0_17 = arith.constant 0 : index
      %32 = vector.load %arg7[%c0_15, %c0_16, %c0_17] : memref<4x8x1xf32, #tpu.memory_space<vmem>>, vector<4x8x1xf32>
      %cst_18 = arith.constant dense<0xFF800000> : vector<4x8xf32>
      %33 = vector.multi_reduction <maximumf>, %31, %cst_18 [2] : vector<4x8x8xf32> to vector<4x8xf32>
      %34 = vector.shape_cast %33 : vector<4x8xf32> to vector<4x8x1xf32>
      %35 = arith.maximumf %32, %34 : vector<4x8x1xf32>
      %36 = arith.subf %32, %35 : vector<4x8x1xf32>
      %37 = math.exp %36 : vector<4x8x1xf32>
      %38 = vector.broadcast %35 : vector<4x8x1xf32> to vector<4x8x8xf32>
      %39 = arith.subf %31, %38 : vector<4x8x8xf32>
      %40 = math.exp %39 : vector<4x8x8xf32>
      %c0_19 = arith.constant 0 : index
      %c0_20 = arith.constant 0 : index
      %c0_21 = arith.constant 0 : index
      %41 = vector.load %arg8[%c0_19, %c0_20, %c0_21] : memref<4x8x1xf32, #tpu.memory_space<vmem>>, vector<4x8x1xf32>
      %42 = arith.mulf %37, %41 : vector<4x8x1xf32>
      %cst_22 = arith.constant dense<0.000000e+00> : vector<4x8xf32>
      %43 = vector.multi_reduction <add>, %40, %cst_22 [2] : vector<4x8x8xf32> to vector<4x8xf32>
      %44 = vector.shape_cast %43 : vector<4x8xf32> to vector<4x8x1xf32>
      %45 = arith.addf %42, %44 : vector<4x8x1xf32>
      %c0_23 = arith.constant 0 : index
      %c0_24 = arith.constant 0 : index
      %c0_25 = arith.constant 0 : index
      %46 = vector.load %arg8[%c0_23, %c0_24, %c0_25] : memref<4x8x1xf32, #tpu.memory_space<vmem>>, vector<4x8x1xf32>
      tpu.vector_store %arg8[%c0_23, %c0_24, %c0_25], %45 {strides = array<i32>} : memref<4x8x1xf32, #tpu.memory_space<vmem>>, vector<4x8x1xf32>,
      %c0_26 = arith.constant 0 : index
      %c0_27 = arith.constant 0 : index
      %c0_28 = arith.constant 0 : index
      %47 = vector.load %arg9[%c0_26, %c0_27, %c0_28] : memref<4x8x8xf32, #tpu.memory_space<vmem>>, vector<4x8x8xf32>
      %48 = vector.broadcast %37 : vector<4x8x1xf32> to vector<4x8x8xf32>
      %49 = arith.mulf %48, %47 : vector<4x8x8xf32>
      %50 = arith.truncf %40 : vector<4x8x8xf32> to vector<4x8x8xbf16>
      %c0_29 = arith.constant 0 : index
      %c0_30 = arith.constant 0 : index
      %c0_31 = arith.constant 0 : index
      %c0_32 = arith.constant 0 : index
      %51 = vector.load %arg5[%c0_29, %c0_30, %c0_31, %c0_32] : memref<1x4x8x8xf32, #tpu.memory_space<vmem>>, vector<1x4x8x8xf32>
      %52 = vector.shape_cast %51 : vector<1x4x8x8xf32> to vector<4x8x8xf32>
      %53 = arith.truncf %52 : vector<4x8x8xf32> to vector<4x8x8xbf16>
      %cst_33 = arith.constant dense<0.000000e+00> : vector<4x8x8xf32>
      %54 = tpu.matmul %50, %53, %cst_33 {dimension_numbers = #tpu.dot_dimension_numbers<[2], [1], [1], [2], [0, 0, 0, 1, 1, 2], [0], [0]>} : vector<4x8x8xbf16>, vector<4x8x8xbf16>, vector<4x8x8xf32> -> vector<4x8x8xf32>
      %55 = arith.addf %49, %54 : vector<4x8x8xf32>
      %c0_34 = arith.constant 0 : index
      %c0_35 = arith.constant 0 : index
      %c0_36 = arith.constant 0 : index
      %56 = vector.load %arg9[%c0_34, %c0_35, %c0_36] : memref<4x8x8xf32, #tpu.memory_space<vmem>>, vector<4x8x8xf32>
      tpu.vector_store %arg9[%c0_34, %c0_35, %c0_36], %55 {strides = array<i32>} : memref<4x8x8xf32, #tpu.memory_space<vmem>>, vector<4x8x8xf32>,
      %c0_37 = arith.constant 0 : index
      %c0_38 = arith.constant 0 : index
      %c0_39 = arith.constant 0 : index
      %57 = vector.load %arg7[%c0_37, %c0_38, %c0_39] : memref<4x8x1xf32, #tpu.memory_space<vmem>>, vector<4x8x1xf32>
      tpu.vector_store %arg7[%c0_37, %c0_38, %c0_39], %35 {strides = array<i32>} : memref<4x8x1xf32, #tpu.memory_space<vmem>>, vector<4x8x1xf32>,
    } else {
    }
    %c0_i32_4 = arith.constant 0 : i32
    %9 = arith.cmpi eq, %arg2, %c0_i32_4 : i32
    %10 = arith.extui %9 : i1 to i32
    %c0_i32_5 = arith.constant 0 : i32
    %11 = arith.cmpi ne, %10, %c0_i32_5 : i32
    scf.if %11 {
      %c0 = arith.constant 0 : index
      %c0_6 = arith.constant 0 : index
      %c0_7 = arith.constant 0 : index
      %12 = vector.load %arg9[%c0, %c0_6, %c0_7] : memref<4x8x8xf32, #tpu.memory_space<vmem>>, vector<4x8x8xf32>
      %c0_8 = arith.constant 0 : index
      %c0_9 = arith.constant 0 : index
      %c0_10 = arith.constant 0 : index
      %13 = vector.load %arg8[%c0_8, %c0_9, %c0_10] : memref<4x8x1xf32, #tpu.memory_space<vmem>>, vector<4x8x1xf32>
      %14 = tpu.reciprocal %13 {approx = true} : vector<4x8x1xf32> -> vector<4x8x1xf32>
      %15 = vector.broadcast %14 : vector<4x8x1xf32> to vector<4x8x8xf32>
      %16 = arith.mulf %12, %15 : vector<4x8x8xf32>
      %c0_11 = arith.constant 0 : index
      %c0_12 = arith.constant 0 : index
      %c0_13 = arith.constant 0 : index
      %c0_14 = arith.constant 0 : index
      %17 = vector.load %arg6[%c0_11, %c0_12, %c0_13, %c0_14] : memref<1x4x8x8xf32, #tpu.memory_space<vmem>>, vector<1x4x8x8xf32>
      %18 = vector.shape_cast %17 : vector<1x4x8x8xf32> to vector<4x8x8xf32>
      %19 = vector.shape_cast %16 : vector<4x8x8xf32> to vector<1x4x8x8xf32>
      tpu.vector_store %arg6[%c0_11, %c0_12, %c0_13, %c0_14], %19 {strides = array<i32>} : memref<1x4x8x8xf32, #tpu.memory_space<vmem>>, vector<1x4x8x8xf32>,
    } else {
    }
    return
  }
  func.func @transform_0(%arg0: i32, %arg1: i32, %arg2: i32) -> (i32, i32, i32, i32) {
    %c0_i32 = arith.constant 0 : i32
    %c0_i32_0 = arith.constant 0 : i32
    %c0_i32_1 = arith.constant 0 : i32
    return %arg0, %c0_i32, %arg1, %c0_i32_0 : i32, i32, i32, i32
  }
  func.func @transform_1(%arg0: i32, %arg1: i32, %arg2: i32) -> (i32, i32, i32, i32) {
    %c0_i32 = arith.constant 0 : i32
    %c0_i32_0 = arith.constant 0 : i32
    %c0_i32_1 = arith.constant 0 : i32
    return %arg0, %c0_i32, %arg2, %c0_i32_0 : i32, i32, i32, i32
  }
  func.func @transform_2(%arg0: i32, %arg1: i32, %arg2: i32) -> (i32, i32, i32, i32) {
    %c0_i32 = arith.constant 0 : i32
    %c0_i32_0 = arith.constant 0 : i32
    %c0_i32_1 = arith.constant 0 : i32
    return %arg0, %c0_i32, %arg2, %c0_i32_0 : i32, i32, i32, i32
  }
  func.func @transform_3(%arg0: i32, %arg1: i32, %arg2: i32) -> (i32, i32, i32, i32) {
    %c0_i32 = arith.constant 0 : i32
    %c0_i32_0 = arith.constant 0 : i32
    %c0_i32_1 = arith.constant 0 : i32
    return %arg0, %c0_i32, %arg1, %c0_i32_0 : i32, i32, i32, i32
  }
}

module attributes {stable_mosaic.version = 11 : i64} {
  func.func @_ln_kernel(%arg0: i32, %arg1: memref<16x32xf32, #tpu.memory_space<vmem>>, %arg2: memref<1x32xf32, #tpu.memory_space<vmem>>, %arg3: memref<1x32xf32, #tpu.memory_space<vmem>>, %arg4: memref<16x32xf32, #tpu.memory_space<vmem>>) attributes {dimension_semantics = [#tpu.dimension_semantics<parallel>], iteration_bounds = array<i64: 1>, scalar_prefetch = 0 : i64, scratch_operands = 0 : i64, tpu.core_type = #tpu.core_type<tc>, window_params = [{transform_indices = @transform_0, window_bounds = array<i64: 16, 32>}, {pipeline_mode = #tpu.pipeline_mode<synchronous>, transform_indices = @transform_1, window_bounds = array<i64: 1, 32>}, {pipeline_mode = #tpu.pipeline_mode<synchronous>, transform_indices = @transform_2, window_bounds = array<i64: 1, 32>}, {transform_indices = @transform_3, window_bounds = array<i64: 16, 32>}]} {
    %c0 = arith.constant 0 : index
    %c0_0 = arith.constant 0 : index
    %0 = vector.load %arg1[%c0, %c0_0] : memref<16x32xf32, #tpu.memory_space<vmem>>, vector<16x32xf32>
    %cst = arith.constant dense<0.000000e+00> : vector<16xf32>
    %1 = vector.multi_reduction <add>, %0, %cst [1] : vector<16x32xf32> to vector<16xf32>
    %2 = vector.shape_cast %1 : vector<16xf32> to vector<16x1xf32>
    %cst_1 = arith.constant 3.200000e+01 : f32
    %3 = vector.broadcast %cst_1 : f32 to vector<16x1xf32>
    %4 = arith.divf %2, %3 : vector<16x1xf32>
    %5 = vector.broadcast %4 : vector<16x1xf32> to vector<16x32xf32>
    %6 = arith.subf %0, %5 : vector<16x32xf32>
    %7 = arith.mulf %6, %6 : vector<16x32xf32>
    %cst_2 = arith.constant dense<0.000000e+00> : vector<16xf32>
    %8 = vector.multi_reduction <add>, %7, %cst_2 [1] : vector<16x32xf32> to vector<16xf32>
    %9 = vector.shape_cast %8 : vector<16xf32> to vector<16x1xf32>
    %cst_3 = arith.constant 3.200000e+01 : f32
    %10 = vector.broadcast %cst_3 : f32 to vector<16x1xf32>
    %11 = arith.divf %9, %10 : vector<16x1xf32>
    %12 = vector.broadcast %4 : vector<16x1xf32> to vector<16x32xf32>
    %13 = arith.subf %0, %12 : vector<16x32xf32>
    %cst_4 = arith.constant 9.99999996E-13 : f32
    %14 = vector.broadcast %cst_4 : f32 to vector<16x1xf32>
    %15 = arith.addf %11, %14 : vector<16x1xf32>
    %16 = math.rsqrt %15 : vector<16x1xf32>
    %17 = vector.broadcast %16 : vector<16x1xf32> to vector<16x32xf32>
    %18 = arith.mulf %13, %17 : vector<16x32xf32>
    %c0_5 = arith.constant 0 : index
    %c0_6 = arith.constant 0 : index
    %19 = vector.load %arg2[%c0_5, %c0_6] : memref<1x32xf32, #tpu.memory_space<vmem>>, vector<1x32xf32>
    %20 = vector.broadcast %19 : vector<1x32xf32> to vector<16x32xf32>
    %21 = arith.mulf %18, %20 : vector<16x32xf32>
    %c0_7 = arith.constant 0 : index
    %c0_8 = arith.constant 0 : index
    %22 = vector.load %arg3[%c0_7, %c0_8] : memref<1x32xf32, #tpu.memory_space<vmem>>, vector<1x32xf32>
    %23 = vector.broadcast %22 : vector<1x32xf32> to vector<16x32xf32>
    %24 = arith.addf %21, %23 : vector<16x32xf32>
    %c0_9 = arith.constant 0 : index
    %c0_10 = arith.constant 0 : index
    %25 = vector.load %arg4[%c0_9, %c0_10] : memref<16x32xf32, #tpu.memory_space<vmem>>, vector<16x32xf32>
    tpu.vector_store %arg4[%c0_9, %c0_10], %24 {strides = array<i32>} : memref<16x32xf32, #tpu.memory_space<vmem>>, vector<16x32xf32>,
    return
  }
  func.func @transform_0(%arg0: i32) -> (i32, i32) {
    %c0_i32 = arith.constant 0 : i32
    %c0_i32_0 = arith.constant 0 : i32
    return %arg0, %c0_i32 : i32, i32
  }
  func.func @transform_1(%arg0: i32) -> (i32, i32) {
    %c0_i32 = arith.constant 0 : i32
    %c0_i32_0 = arith.constant 0 : i32
    %c0_i32_1 = arith.constant 0 : i32
    return %c0_i32, %c0_i32_0 : i32, i32
  }
  func.func @transform_2(%arg0: i32) -> (i32, i32) {
    %c0_i32 = arith.constant 0 : i32
    %c0_i32_0 = arith.constant 0 : i32
    %c0_i32_1 = arith.constant 0 : i32
    return %c0_i32, %c0_i32_0 : i32, i32
  }
  func.func @transform_3(%arg0: i32) -> (i32, i32) {
    %c0_i32 = arith.constant 0 : i32
    %c0_i32_0 = arith.constant 0 : i32
    return %arg0, %c0_i32 : i32, i32
  }
}

module attributes {stable_mosaic.version = 11 : i64} {
  func.func @_gemm_kernel(%arg0: i32, %arg1: i32, %arg2: i32, %arg3: memref<16x32xf32, #tpu.memory_space<vmem>>, %arg4: memref<32x32xbf16, #tpu.memory_space<vmem>>, %arg5: memref<1x32xf32, #tpu.memory_space<vmem>>, %arg6: memref<16x32xf32, #tpu.memory_space<vmem>>, %arg7: memref<16x32xf32, #tpu.memory_space<vmem>>, %arg8: memref<16x32xf32, #tpu.memory_space<vmem>>) attributes {dimension_semantics = [#tpu.dimension_semantics<parallel>, #tpu.dimension_semantics<parallel>, #tpu.dimension_semantics<arbitrary>], iteration_bounds = array<i64: 1, 1, 1>, scalar_prefetch = 0 : i64, scratch_operands = 1 : i64, tpu.core_type = #tpu.core_type<tc>, window_params = [{transform_indices = @transform_0, window_bounds = array<i64: 16, 32>}, {transform_indices = @transform_1, window_bounds = array<i64: 32, 32>}, {transform_indices = @transform_2, window_bounds = array<i64: 1, 32>}, {transform_indices = @transform_3, window_bounds = array<i64: 16, 32>}, {transform_indices = @transform_4, window_bounds = array<i64: 16, 32>}]} {
    %c0_i32 = arith.constant 0 : i32
    %0 = arith.cmpi eq, %arg2, %c0_i32 : i32
    %1 = arith.extui %0 : i1 to i32
    %c0_i32_0 = arith.constant 0 : i32
    %2 = arith.cmpi ne, %1, %c0_i32_0 : i32
    scf.if %2 {
      %cst_10 = arith.constant 0.000000e+00 : f32
      %13 = vector.broadcast %cst_10 : f32 to vector<16x32xf32>
      %c0_11 = arith.constant 0 : index
      %c0_12 = arith.constant 0 : index
      %14 = vector.load %arg8[%c0_11, %c0_12] : memref<16x32xf32, #tpu.memory_space<vmem>>, vector<16x32xf32>
      tpu.vector_store %arg8[%c0_11, %c0_12], %13 {strides = array<i32>} : memref<16x32xf32, #tpu.memory_space<vmem>>, vector<16x32xf32>,
    } else {
    }
    %c0 = arith.constant 0 : index
    %c0_1 = arith.constant 0 : index
    %3 = vector.load %arg8[%c0, %c0_1] : memref<16x32xf32, #tpu.memory_space<vmem>>, vector<16x32xf32>
    %c0_2 = arith.constant 0 : index
    %c0_3 = arith.constant 0 : index
    %4 = vector.load %arg3[%c0_2, %c0_3] : memref<16x32xf32, #tpu.memory_space<vmem>>, vector<16x32xf32>
    %5 = arith.truncf %4 : vector<16x32xf32> to vector<16x32xbf16>
    %c0_4 = arith.constant 0 : index
    %c0_5 = arith.constant 0 : index
    %6 = vector.load %arg4[%c0_4, %c0_5] : memref<32x32xbf16, #tpu.memory_space<vmem>>, vector<32x32xbf16>
    %cst = arith.constant dense<0.000000e+00> : vector<16x32xf32>
    %7 = tpu.matmul %5, %6, %cst {dimension_numbers = #tpu.dot_dimension_numbers<[1], [0], [0], [1], [0, 0, 1, 1], [], []>} : vector<16x32xbf16>, vector<32x32xbf16>, vector<16x32xf32> -> vector<16x32xf32>
    %8 = arith.addf %3, %7 : vector<16x32xf32>
    %c0_6 = arith.constant 0 : index
    %c0_7 = arith.constant 0 : index
    %9 = vector.load %arg8[%c0_6, %c0_7] : memref<16x32xf32, #tpu.memory_space<vmem>>, vector<16x32xf32>
    tpu.vector_store %arg8[%c0_6, %c0_7], %8 {strides = array<i32>} : memref<16x32xf32, #tpu.memory_space<vmem>>, vector<16x32xf32>,
    %c0_i32_8 = arith.constant 0 : i32
    %10 = arith.cmpi eq, %arg2, %c0_i32_8 : i32
    %11 = arith.extui %10 : i1 to i32
    %c0_i32_9 = arith.constant 0 : i32
    %12 = arith.cmpi ne, %11, %c0_i32_9 : i32
    scf.if %12 {
      %c0_10 = arith.constant 0 : index
      %c0_11 = arith.constant 0 : index
      %13 = vector.load %arg8[%c0_10, %c0_11] : memref<16x32xf32, #tpu.memory_space<vmem>>, vector<16x32xf32>
      %c0_12 = arith.constant 0 : index
      %c0_13 = arith.constant 0 : index
      %14 = vector.load %arg5[%c0_12, %c0_13] : memref<1x32xf32, #tpu.memory_space<vmem>>, vector<1x32xf32>
      %15 = vector.broadcast %14 : vector<1x32xf32> to vector<16x32xf32>
      %16 = arith.addf %13, %15 : vector<16x32xf32>
      %c0_14 = arith.constant 0 : index
      %c0_15 = arith.constant 0 : index
      %17 = vector.load %arg6[%c0_14, %c0_15] : memref<16x32xf32, #tpu.memory_space<vmem>>, vector<16x32xf32>
      %18 = arith.addf %16, %17 : vector<16x32xf32>
      %c0_16 = arith.constant 0 : index
      %c0_17 = arith.constant 0 : index
      %19 = vector.load %arg7[%c0_16, %c0_17] : memref<16x32xf32, #tpu.memory_space<vmem>>, vector<16x32xf32>
      tpu.vector_store %arg7[%c0_16, %c0_17], %18 {strides = array<i32>} : memref<16x32xf32, #tpu.memory_space<vmem>>, vector<16x32xf32>,
    } else {
    }
    return
  }
  func.func @transform_0(%arg0: i32, %arg1: i32, %arg2: i32) -> (i32, i32) {
    %c0_i32 = arith.constant 0 : i32
    return %arg0, %arg2 : i32, i32
  }
  func.func @transform_1(%arg0: i32, %arg1: i32, %arg2: i32) -> (i32, i32) {
    %c0_i32 = arith.constant 0 : i32
    return %arg2, %arg1 : i32, i32
  }
  func.func @transform_2(%arg0: i32, %arg1: i32, %arg2: i32) -> (i32, i32) {
    %c0_i32 = arith.constant 0 : i32
    %c0_i32_0 = arith.constant 0 : i32
    return %c0_i32, %arg1 : i32, i32
  }
  func.func @transform_3(%arg0: i32, %arg1: i32, %arg2: i32) -> (i32, i32) {
    %c0_i32 = arith.constant 0 : i32
    return %arg0, %arg1 : i32, i32
  }
  func.func @transform_4(%arg0: i32, %arg1: i32, %arg2: i32) -> (i32, i32) {
    %c0_i32 = arith.constant 0 : i32
    return %arg0, %arg1 : i32, i32
  }
}

module attributes {stable_mosaic.version = 11 : i64} {
  func.func @_gemm_kernel(%arg0: i32, %arg1: i32, %arg2: i32, %arg3: memref<16x32xf32, #tpu.memory_space<vmem>>, %arg4: memref<32x128xbf16, #tpu.memory_space<vmem>>, %arg5: memref<1x128xf32, #tpu.memory_space<vmem>>, %arg6: memref<16x128xf32, #tpu.memory_space<vmem>>, %arg7: memref<16x128xf32, #tpu.memory_space<vmem>>) attributes {dimension_semantics = [#tpu.dimension_semantics<parallel>, #tpu.dimension_semantics<parallel>, #tpu.dimension_semantics<arbitrary>], iteration_bounds = array<i64: 1, 1, 1>, scalar_prefetch = 0 : i64, scratch_operands = 1 : i64, tpu.core_type = #tpu.core_type<tc>, window_params = [{transform_indices = @transform_0, window_bounds = array<i64: 16, 32>}, {transform_indices = @transform_1, window_bounds = array<i64: 32, 128>}, {transform_indices = @transform_2, window_bounds = array<i64: 1, 128>}, {transform_indices = @transform_3, window_bounds = array<i64: 16, 128>}]} {
    %c0_i32 = arith.constant 0 : i32
    %0 = arith.cmpi eq, %arg2, %c0_i32 : i32
    %1 = arith.extui %0 : i1 to i32
    %c0_i32_0 = arith.constant 0 : i32
    %2 = arith.cmpi ne, %1, %c0_i32_0 : i32
    scf.if %2 {
      %cst_10 = arith.constant 0.000000e+00 : f32
      %13 = vector.broadcast %cst_10 : f32 to vector<16x128xf32>
      %c0_11 = arith.constant 0 : index
      %c0_12 = arith.constant 0 : index
      %14 = vector.load %arg7[%c0_11, %c0_12] : memref<16x128xf32, #tpu.memory_space<vmem>>, vector<16x128xf32>
      tpu.vector_store %arg7[%c0_11, %c0_12], %13 {strides = array<i32>} : memref<16x128xf32, #tpu.memory_space<vmem>>, vector<16x128xf32>,
    } else {
    }
    %c0 = arith.constant 0 : index
    %c0_1 = arith.constant 0 : index
    %3 = vector.load %arg7[%c0, %c0_1] : memref<16x128xf32, #tpu.memory_space<vmem>>, vector<16x128xf32>
    %c0_2 = arith.constant 0 : index
    %c0_3 = arith.constant 0 : index
    %4 = vector.load %arg3[%c0_2, %c0_3] : memref<16x32xf32, #tpu.memory_space<vmem>>, vector<16x32xf32>
    %5 = arith.truncf %4 : vector<16x32xf32> to vector<16x32xbf16>
    %c0_4 = arith.constant 0 : index
    %c0_5 = arith.constant 0 : index
    %6 = vector.load %arg4[%c0_4, %c0_5] : memref<32x128xbf16, #tpu.memory_space<vmem>>, vector<32x128xbf16>
    %cst = arith.constant dense<0.000000e+00> : vector<16x128xf32>
    %7 = tpu.matmul %5, %6, %cst {dimension_numbers = #tpu.dot_dimension_numbers<[1], [0], [0], [1], [0, 0, 1, 1], [], []>} : vector<16x32xbf16>, vector<32x128xbf16>, vector<16x128xf32> -> vector<16x128xf32>
    %8 = arith.addf %3, %7 : vector<16x128xf32>
    %c0_6 = arith.constant 0 : index
    %c0_7 = arith.constant 0 : index
    %9 = vector.load %arg7[%c0_6, %c0_7] : memref<16x128xf32, #tpu.memory_space<vmem>>, vector<16x128xf32>
    tpu.vector_store %arg7[%c0_6, %c0_7], %8 {strides = array<i32>} : memref<16x128xf32, #tpu.memory_space<vmem>>, vector<16x128xf32>,
    %c0_i32_8 = arith.constant 0 : i32
    %10 = arith.cmpi eq, %arg2, %c0_i32_8 : i32
    %11 = arith.extui %10 : i1 to i32
    %c0_i32_9 = arith.constant 0 : i32
    %12 = arith.cmpi ne, %11, %c0_i32_9 : i32
    scf.if %12 {
      %c0_10 = arith.constant 0 : index
      %c0_11 = arith.constant 0 : index
      %13 = vector.load %arg7[%c0_10, %c0_11] : memref<16x128xf32, #tpu.memory_space<vmem>>, vector<16x128xf32>
      %c0_12 = arith.constant 0 : index
      %c0_13 = arith.constant 0 : index
      %14 = vector.load %arg5[%c0_12, %c0_13] : memref<1x128xf32, #tpu.memory_space<vmem>>, vector<1x128xf32>
      %15 = vector.broadcast %14 : vector<1x128xf32> to vector<16x128xf32>
      %16 = arith.addf %13, %15 : vector<16x128xf32>
      %cst_14 = arith.constant 5.000000e-01 : f32
      %17 = vector.broadcast %cst_14 : f32 to vector<16x128xf32>
      %18 = arith.mulf %17, %16 : vector<16x128xf32>
      %cst_15 = arith.constant 4.471500e-02 : f32
      %19 = vector.broadcast %cst_15 : f32 to vector<16x128xf32>
      %20 = arith.mulf %19, %16 : vector<16x128xf32>
      %21 = arith.mulf %20, %16 : vector<16x128xf32>
      %22 = arith.mulf %21, %16 : vector<16x128xf32>
      %23 = arith.addf %16, %22 : vector<16x128xf32>
      %cst_16 = arith.constant 0.797884583 : f32
      %24 = vector.broadcast %cst_16 : f32 to vector<16x128xf32>
      %25 = arith.mulf %24, %23 : vector<16x128xf32>
      %26 = math.tanh %25 : vector<16x128xf32>
      %cst_17 = arith.constant 1.000000e+00 : f32
      %27 = vector.broadcast %cst_17 : f32 to vector<16x128xf32>
      %28 = arith.addf %27, %26 : vector<16x128xf32>
      %29 = arith.mulf %18, %28 : vector<16x128xf32>
      %c0_18 = arith.constant 0 : index
      %c0_19 = arith.constant 0 : index
      %30 = vector.load %arg6[%c0_18, %c0_19] : memref<16x128xf32, #tpu.memory_space<vmem>>, vector<16x128xf32>
      tpu.vector_store %arg6[%c0_18, %c0_19], %29 {strides = array<i32>} : memref<16x128xf32, #tpu.memory_space<vmem>>, vector<16x128xf32>,
    } else {
    }
    return
  }
  func.func @transform_0(%arg0: i32, %arg1: i32, %arg2: i32) -> (i32, i32) {
    %c0_i32 = arith.constant 0 : i32
    return %arg0, %arg2 : i32, i32
  }
  func.func @transform_1(%arg0: i32, %arg1: i32, %arg2: i32) -> (i32, i32) {
    %c0_i32 = arith.constant 0 : i32
    return %arg2, %arg1 : i32, i32
  }
  func.func @transform_2(%arg0: i32, %arg1: i32, %arg2: i32) -> (i32, i32) {
    %c0_i32 = arith.constant 0 : i32
    %c0_i32_0 = arith.constant 0 : i32
    return %c0_i32, %arg1 : i32, i32
  }
  func.func @transform_3(%arg0: i32, %arg1: i32, %arg2: i32) -> (i32, i32) {
    %c0_i32 = arith.constant 0 : i32
    return %arg0, %arg1 : i32, i32
  }
}

module attributes {stable_mosaic.version = 11 : i64} {
  func.func @_gemm_kernel(%arg0: i32, %arg1: i32, %arg2: i32, %arg3: memref<16x128xf32, #tpu.memory_space<vmem>>, %arg4: memref<128x32xbf16, #tpu.memory_space<vmem>>, %arg5: memref<1x32xf32, #tpu.memory_space<vmem>>, %arg6: memref<16x32xf32, #tpu.memory_space<vmem>>, %arg7: memref<16x32xf32, #tpu.memory_space<vmem>>, %arg8: memref<16x32xf32, #tpu.memory_space<vmem>>) attributes {dimension_semantics = [#tpu.dimension_semantics<parallel>, #tpu.dimension_semantics<parallel>, #tpu.dimension_semantics<arbitrary>], iteration_bounds = array<i64: 1, 1, 1>, scalar_prefetch = 0 : i64, scratch_operands = 1 : i64, tpu.core_type = #tpu.core_type<tc>, window_params = [{transform_indices = @transform_0, window_bounds = array<i64: 16, 128>}, {transform_indices = @transform_1, window_bounds = array<i64: 128, 32>}, {transform_indices = @transform_2, window_bounds = array<i64: 1, 32>}, {transform_indices = @transform_3, window_bounds = array<i64: 16, 32>}, {transform_indices = @transform_4, window_bounds = array<i64: 16, 32>}]} {
    %c0_i32 = arith.constant 0 : i32
    %0 = arith.cmpi eq, %arg2, %c0_i32 : i32
    %1 = arith.extui %0 : i1 to i32
    %c0_i32_0 = arith.constant 0 : i32
    %2 = arith.cmpi ne, %1, %c0_i32_0 : i32
    scf.if %2 {
      %cst_10 = arith.constant 0.000000e+00 : f32
      %13 = vector.broadcast %cst_10 : f32 to vector<16x32xf32>
      %c0_11 = arith.constant 0 : index
      %c0_12 = arith.constant 0 : index
      %14 = vector.load %arg8[%c0_11, %c0_12] : memref<16x32xf32, #tpu.memory_space<vmem>>, vector<16x32xf32>
      tpu.vector_store %arg8[%c0_11, %c0_12], %13 {strides = array<i32>} : memref<16x32xf32, #tpu.memory_space<vmem>>, vector<16x32xf32>,
    } else {
    }
    %c0 = arith.constant 0 : index
    %c0_1 = arith.constant 0 : index
    %3 = vector.load %arg8[%c0, %c0_1] : memref<16x32xf32, #tpu.memory_space<vmem>>, vector<16x32xf32>
    %c0_2 = arith.constant 0 : index
    %c0_3 = arith.constant 0 : index
    %4 = vector.load %arg3[%c0_2, %c0_3] : memref<16x128xf32, #tpu.memory_space<vmem>>, vector<16x128xf32>
    %5 = arith.truncf %4 : vector<16x128xf32> to vector<16x128xbf16>
    %c0_4 = arith.constant 0 : index
    %c0_5 = arith.constant 0 : index
    %6 = vector.load %arg4[%c0_4, %c0_5] : memref<128x32xbf16, #tpu.memory_space<vmem>>, vector<128x32xbf16>
    %cst = arith.constant dense<0.000000e+00> : vector<16x32xf32>
    %7 = tpu.matmul %5, %6, %cst {dimension_numbers = #tpu.dot_dimension_numbers<[1], [0], [0], [1], [0, 0, 1, 1], [], []>} : vector<16x128xbf16>, vector<128x32xbf16>, vector<16x32xf32> -> vector<16x32xf32>
    %8 = arith.addf %3, %7 : vector<16x32xf32>
    %c0_6 = arith.constant 0 : index
    %c0_7 = arith.constant 0 : index
    %9 = vector.load %arg8[%c0_6, %c0_7] : memref<16x32xf32, #tpu.memory_space<vmem>>, vector<16x32xf32>
    tpu.vector_store %arg8[%c0_6, %c0_7], %8 {strides = array<i32>} : memref<16x32xf32, #tpu.memory_space<vmem>>, vector<16x32xf32>,
    %c0_i32_8 = arith.constant 0 : i32
    %10 = arith.cmpi eq, %arg2, %c0_i32_8 : i32
    %11 = arith.extui %10 : i1 to i32
    %c0_i32_9 = arith.constant 0 : i32
    %12 = arith.cmpi ne, %11, %c0_i32_9 : i32
    scf.if %12 {
      %c0_10 = arith.constant 0 : index
      %c0_11 = arith.constant 0 : index
      %13 = vector.load %arg8[%c0_10, %c0_11] : memref<16x32xf32, #tpu.memory_space<vmem>>, vector<16x32xf32>
      %c0_12 = arith.constant 0 : index
      %c0_13 = arith.constant 0 : index
      %14 = vector.load %arg5[%c0_12, %c0_13] : memref<1x32xf32, #tpu.memory_space<vmem>>, vector<1x32xf32>
      %15 = vector.broadcast %14 : vector<1x32xf32> to vector<16x32xf32>
      %16 = arith.addf %13, %15 : vector<16x32xf32>
      %c0_14 = arith.constant 0 : index
      %c0_15 = arith.constant 0 : index
      %17 = vector.load %arg6[%c0_14, %c0_15] : memref<16x32xf32, #tpu.memory_space<vmem>>, vector<16x32xf32>
      %18 = arith.addf %16, %17 : vector<16x32xf32>
      %c0_16 = arith.constant 0 : index
      %c0_17 = arith.constant 0 : index
      %19 = vector.load %arg7[%c0_16, %c0_17] : memref<16x32xf32, #tpu.memory_space<vmem>>, vector<16x32xf32>
      tpu.vector_store %arg7[%c0_16, %c0_17], %18 {strides = array<i32>} : memref<16x32xf32, #tpu.memory_space<vmem>>, vector<16x32xf32>,
    } else {
    }
    return
  }
  func.func @transform_0(%arg0: i32, %arg1: i32, %arg2: i32) -> (i32, i32) {
    %c0_i32 = arith.constant 0 : i32
    return %arg0, %arg2 : i32, i32
  }
  func.func @transform_1(%arg0: i32, %arg1: i32, %arg2: i32) -> (i32, i32) {
    %c0_i32 = arith.constant 0 : i32
    return %arg2, %arg1 : i32, i32
  }
  func.func @transform_2(%arg0: i32, %arg1: i32, %arg2: i32) -> (i32, i32) {
    %c0_i32 = arith.constant 0 : i32
    %c0_i32_0 = arith.constant 0 : i32
    return %c0_i32, %arg1 : i32, i32
  }
  func.func @transform_3(%arg0: i32, %arg1: i32, %arg2: i32) -> (i32, i32) {
    %c0_i32 = arith.constant 0 : i32
    return %arg0, %arg1 : i32, i32
  }
  func.func @transform_4(%arg0: i32, %arg1: i32, %arg2: i32) -> (i32, i32) {
    %c0_i32 = arith.constant 0 : i32
    return %arg0, %arg1 : i32, i32
  }
}

</mosaic_0001>

<bundles_post_ra>
// kernel: deepspeed_transformer_inference.7
= control target key start
LH: loop header
LB: loop body
LE: loop exit
PB: predicated region body
PF: predicated region fallthrough
CT: control target
= control target key end

     0   :  { %8 = vsyncpa [#allocation3], 0  ;;  %s141_s15 = smov [#allocation2]   ;;  %s142_s17 = smov 128   ;;  %s186_s0 = inlined_call_operand.hbm [shape: f32[16,32], index: 0, kind: input, shape index: {}]   ;;  %s187_s1 = inlined_call_operand.vmem [shape: f32[1,32], index: 1, kind: input, shape index: {}]   ;;  %s188_s2 = inlined_call_operand.vmem [shape: f32[1,32], index: 2, kind: input, shape index: {}]   ;;  %s189_s3 = inlined_call_operand.vmem [shape: f32[16,32], index: 3, kind: output, shape index: {}]  }
   0x1   :  { %s13_s14 = sshll.u32 %s186_s0, 4  ;;  %s15_s16 = sshll.u32 %s141_s15, 4  ;;  %s14_s14 = int_to_ptr.hbm [resolvable:$true] %s13_s14  ;;  %s16_s16 = int_to_ptr.vmem [resolvable:$true] %s15_s16 }
   0x2   :  { %s143_s18 = smov 8  }
   0x3   :  { %21 = dma.hbm_to_vmem [thread:$0]  %s14_s14, 256, %s16_s16, [#allocation3], %s142_s17, %s142_s17, %s143_s18  }
   0x4   :  { %139 = dma.done.wait [#allocation3], 256  }
   0x5   :  { %140 = vsyncadd [#allocation3], 4294967040  ;;  %vm32_vm0 = vcmask 261120   ;;  %v30_v0 = vld [vmem:[#allocation2] sm:$0xff]  ;;  %v31_v2 = vld [vmem:[#allocation2 + $0x8] sm:$0xff]  ;;  %v144_v4 = vmov 32.0  }
   0x6   :  { %v33_v1 = vsel %vm32_vm0, %v30_v0, 0.0  ;;  %v36_v3 = vsel %vm32_vm0, %v31_v2, 0.0  ;;  %109 = vrcp.f32 %v144_v4  ;;  %v107_v35 = vld [vmem:[%s187_s1] ss:$0 sm:$0xff] }
   0x7   :  { %34 = vadd.xlane.f32.xlu0 %v33_v1  ;;  %v108_v38 = vld [vmem:[%s188_s2] ss:$0 sm:$0xff] }
   0xc   :  { %v110_v5 = vpop.eup %109 }
   0xd   :  { %v40_v6 = vmul.f32 32.0, %v110_v5  ;;  %vm44_vm1 = vweird.f32 %v110_v5 }
   0xf   :  { %37 = vadd.xlane.f32.xlu0 %v36_v3  ;;  %v41_v7 = vsub.f32 1.0, %v40_v6 }
  0x11   :  { %v42_v8 = vmul.f32 %v110_v5, %v41_v7 }
  0x13   :  { %v43_v9 = vadd.f32 %v110_v5, %v42_v8 }
  0x15   :  { %v45_v10 = vsel %vm44_vm1, %v110_v5, %v43_v9 }
  0x7a   :  { %v35_v11 = vpop.xlane.xlu0 %34 }
  0x7b   :  { %v46_v12 = vmul.f32 %v45_v10, %v35_v11 }
  0x7d   :  { %v48_v13 = vsub.f32 %v30_v0, %v46_v12 }
  0x7f   :  { %v50_v14 = vmul.f32 %v48_v13, %v48_v13 }
  0x81   :  { %v52_v15 = vsel %vm32_vm0, %v50_v14, 0.0 }
  0x82   :  { %53 = vadd.xlane.f32.xlu1 %v52_v15  ;;  %v38_v16 = vpop.xlane.xlu0 %37 }
  0x83   :  { %v47_v17 = vmul.f32 %v45_v10, %v38_v16 }
  0x85   :  { %v49_v18 = vsub.f32 %v31_v2, %v47_v17 }
  0x87   :  { %v51_v19 = vmul.f32 %v49_v18, %v49_v18 }
  0x89   :  { %v55_v20 = vsel %vm32_vm0, %v51_v19, 0.0 }
  0x8a   :  { %56 = vadd.xlane.f32.xlu1 %v55_v20 }
  0xf5   :  { %v54_v21 = vpop.xlane.xlu1 %53 }
  0xf6   :  { %v58_v22 = vmul.f32 %v54_v21, %v45_v10 }
  0xf8   :  { %v60_v23 = vadd.f32 1e-12, %v58_v22 }
  0xfa   :  { %111 = vrsqrt.f32 %v60_v23  ;;  %vm68_vm3 = vweird.f32 %v60_v23 }
  0xfd   :  { %v57_v24 = vpop.xlane.xlu1 %56 }
  0xfe   :  { %v59_v25 = vmul.f32 %v57_v24, %v45_v10 }
 0x100   :  { %v112_v26 = vpop.eup %111  ;;  %v61_v27 = vadd.f32 1e-12, %v59_v25 }
 0x101   :  { %v63_v28 = vmul.f32 %v112_v26, %v60_v23  ;;  %vm69_vm2 = vweird.f32 %v112_v26 }
 0x102   :  { %113 = vrsqrt.f32 %v61_v27  ;;  %vm70_vm4 = vmor %vm68_vm3, %vm69_vm2  ;;  %vm78_vm6 = vweird.f32 %v61_v27 }
 0x103   :  { %v64_v29 = vmul.f32 %v112_v26, %v63_v28 }
 0x105   :  { %v65_v30 = vmul.f32 0.5, %v64_v29 }
 0x107   :  { %v66_v31 = vsub.f32 1.5, %v65_v30 }
 0x108   :  { %v114_v32 = vpop.eup %113 }
 0x109   :  { %v67_v33 = vmul.f32 %v112_v26, %v66_v31  ;;  %v73_v34 = vmul.f32 %v114_v32, %v61_v27  ;;  %vm79_vm5 = vweird.f32 %v114_v32 }
 0x10a   :  { %vm80_vm7 = vmor %vm78_vm6, %vm79_vm5 }
 0x10b   :  { %v71_v36 = vsel %vm70_vm4, %v112_v26, %v67_v33  ;;  %v74_v37 = vmul.f32 %v114_v32, %v73_v34 }
 0x10c   :  { %v82_v39 = vmul.f32 %v71_v36, %v48_v13 }
 0x10d   :  { %v75_v40 = vmul.f32 0.5, %v74_v37 }
 0x10e   :  { %v88_v41 = vmul.f32 %v107_v35, %v82_v39 }
 0x10f   :  { %v76_v42 = vsub.f32 1.5, %v75_v40 }
 0x110   :  { %v94_v43 = vadd.f32 %v108_v38, %v88_v41 }
 0x111   :  { %v77_v44 = vmul.f32 %v114_v32, %v76_v42 }
 0x112   :  { %96 = vst.msk [vmem:[%s189_s3] sm:$0xff] %vm32_vm0, %v94_v43 }
 0x113   :  { %v81_v45 = vsel %vm80_vm7, %v114_v32, %v77_v44 }
 0x114   :  { %v83_v46 = vmul.f32 %v81_v45, %v49_v18 }
 0x116   :  { %v89_v47 = vmul.f32 %v107_v35, %v83_v46 }
 0x118   :  { %v95_v48 = vadd.f32 %v108_v38, %v89_v47 }
 0x11a   :  { %97 = vst.msk [vmem:[%s189_s3 + $0x8] sm:$0xff] %vm32_vm0, %v95_v48 }
 0x11b   :  { %102 = vsyncpa [#allocation3], 1 }

// kernel: deepspeed_transformer_inference.8
= control target key start
LH: loop header
LB: loop body
LE: loop exit
PB: predicated region body
PF: predicated region fallthrough
CT: control target
= control target key end

     0   :  { %vm19_vm0 = vcmask 785408   ;;  %v96_v1 = vmov 0.0   ;;  %vm43_vm1 = vcmask 261120   ;;  %s144_s1 = inlined_call_operand.vmem [shape: bf16[32,96], index: 1, kind: input, shape index: {}]   ;;  %s145_s0 = inlined_call_operand.vmem [shape: f32[16,32], index: 0, kind: input, shape index: {}]   ;;  %s146_s2 = inlined_call_operand.vmem [shape: f32[1,96], index: 2, kind: input, shape index: {}]   ;;  %s147_s3 = inlined_call_operand.vmem [shape: f32[16,96], index: 3, kind: output, shape index: {}]  }
   0x1   :  { %v93_v0 = vld [vmem:[%s144_s1 + $0x8] sm:$0xff]  ;;  %20 = vst.msk [vmem:[#allocation2] sm:$0xff] %vm19_vm0, %v96_v1  ;;  %v92_v2 = vld [vmem:[%s144_s1] sm:$0xff] }
   0x2   :  { %21 = vst.msk [vmem:[#allocation2 + $0x8] sm:$0xff] %vm19_vm0, %v96_v1  ;;  %53 = vmatpush.bf16.msra.mxu0 %v93_v0  ;;  %v24_v3 = vld [vmem:[%s145_s0] sm:$0xff]  ;;  %v25_v4 = vld [vmem:[%s145_s0 + $0x8] sm:$0xff] }
   0x3   :  { %v26_v5 = vpack.c.bf16 %v25_v4, %v24_v3  ;;  %v95_v10 = vld [vmem:[%s146_s2] ss:$0 sm:$0xff] }
   0x6   :  { %54 = vmatpush.bf16.msra.mxu0 %v92_v2 }
   0x8   :  { %v22_v6 = vld [vmem:[#allocation2] sm:$0xff] }
   0x9   :  { %91 = vmatmul.msk.bf16.vlgmr.msra.gmra.mxu0 %vm43_vm1, %v26_v5  ;;  %v23_v9 = vld [vmem:[#allocation2 + $0x8] sm:$0xff] }
  0x86   :  { %v56_v7 = vpop.f32.mrf.mxu0 }
  0x87   :  { %v61_v8 = vadd.f32 %v56_v7, %v22_v6 }
  0x89   :  { %64 = vst.msk [vmem:[#allocation2] sm:$0xff] %vm19_vm0, %v61_v8 }
  0x8e   :  { %v58_v11 = vpop.f32.mrf.mxu0 }
  0x8f   :  { %v62_v12 = vadd.f32 %v58_v11, %v23_v9 }
  0x90   :  { %v69_v13 = vld [vmem:[#allocation2] sm:$0xff] }
  0x91   :  { %v75_v14 = vadd.f32 %v95_v10, %v69_v13  ;;  %65 = vst.msk [vmem:[#allocation2 + $0x8] sm:$0xff] %vm19_vm0, %v62_v12 }
  0x93   :  { %77 = vst.msk [vmem:[%s147_s3] sm:$0xff] %vm19_vm0, %v75_v14 }
  0x98   :  { %v70_v15 = vld [vmem:[#allocation2 + $0x8] sm:$0xff] }
  0x99   :  { %v76_v16 = vadd.f32 %v95_v10, %v70_v15 }
  0x9b   :  { %78 = vst.msk [vmem:[%s147_s3 + $0x8] sm:$0xff] %vm19_vm0, %v76_v16 }

// kernel: deepspeed_transformer_inference.9
= control target key start
LH: loop header
LB: loop body
LE: loop exit
PB: predicated region body
PF: predicated region fallthrough
CT: control target
= control target key end

     0   :  { %s925_s12 = smov 0   ;;  %s927_s13 = smov 0   ;;  %s1090_s0 = inlined_call_operand.vmem [shape: f32[2,4,8,8], index: 0, kind: input, shape index: {}]   ;;  %s1091_s1 = inlined_call_operand.vmem [shape: f32[2,4,8,8], index: 1, kind: input, shape index: {}]   ;;  %s1092_s2 = inlined_call_operand.vmem [shape: f32[2,4,8,8], index: 2, kind: input, shape index: {}]   ;;  %s1093_s3 = inlined_call_operand.vmem [shape: f32[2,4,8,8], index: 3, kind: output, shape index: {}]  }
   0x1   :  { %s929_s14 = smov 0  }
   0x2 LB: > { %s32_s15 = sadd.s32 1, %s896_s13  ;;  %p801_p0 = scmp.ge.s32.totalorder %s900_s14, 1  ;;  %s900_s14 = sphi %s929_s14, %s13_s14   ;;  %s896_s13 = sphi %s927_s13, %s1095_s13   ;;  %s892_s12 = sphi %s925_s12, %s1094_s12  }
   0x3   : > { %p34_p1 = scmp.ge.s32.totalorder %s32_s15, 2  ;;  %p193_p2 = scmp.lt.s32.totalorder %s900_s14, 3 }
   0x5   : > { %s1097_s15 = smov (%p34_p1, %s32_s15), 0  ;;  %p194_p3 = pnand %p801_p0, %p193_p2 }
   0x6   : > { %p239_p4 = scmp.lt.s32.totalorder (!%p194_p3), %s892_s12, 1 }
   0x7   : > { %197 = sbr.rel (%p194_p3) target bundleno = 699 (0x2bb), region = 32 }
   0xc   : > { %s1099_s12 = smov (!%p239_p4, %s892_s12), 1  ;;  %vm285_vm0 = vcmask 64512   ;;  %vm276_vm1 = vcmask 7168   ;;  %v902_v24 = vmov -inf   ;;  %v394_v25 = vlaneseq }
   0xd   : > { %s943_s16 = sshll.u32 %s1099_s12, 5  ;;  %277 = vst.msk [vmem:[#allocation2] sm:$0xff] %vm276_vm1, %v902_v24  ;;  %v903_v44 = vmov 0   ;;  %v904_v45 = vmov 0.0   ;;  %vm545_vm3 = vcmask 1043456  }
   0xe   : > { %s254_s19 = scalar_lea.vmem %s1091_s1, %s943_s16  ;;  %s246_s22 = scalar_lea.vmem %s1090_s0, %s943_s16  ;;  %278 = vst.msk [vmem:[#allocation2 + $0x8] sm:$0xff] %vm276_vm1, %v902_v24  ;;  %v395_v26 = vshrl.u32 %v394_v25, 7  ;;  %v399_v27 = vand.u32 127, %v394_v25  ;;  %852 = vset.pattern.permute.xlu0 %v903_v44  ;;  %851 = vset.pattern.permute.xlu2 %v903_v44 }
   0xf   : > { %v309_v0 = vld [vmem:[%s254_s19] sm:$0xff]  ;;  %v311_v1 = vld [vmem:[%s254_s19 + $0x10] sm:$0xff]  ;;  %v310_v6 = vld [vmem:[%s254_s19 + $0x8] sm:$0xff]  ;;  %279 = vst.msk [vmem:[#allocation2 + $0x10] sm:$0xff] %vm276_vm1, %v902_v24  ;;  %853 = vset.pattern.permute.xlu1 %v903_v44  ;;  %s262_s25 = scalar_lea.vmem %s1092_s2, %s943_s16  ;;  %s270_s28 = scalar_lea.vmem %s1093_s3, %s943_s16 }
  0x10   : > { %v297_v2 = vld [vmem:[%s246_s22] sm:$0xff]  ;;  %v313_v3 = vpack.c.bf16 %v309_v0, %v309_v0  ;;  %v315_v4 = vpack.c.bf16 %v311_v1, %v311_v1  ;;  %v299_v5 = vld [vmem:[%s246_s22 + $0x10] sm:$0xff]  ;;  %v312_v7 = vld [vmem:[%s254_s19 + $0x18] sm:$0xff]  ;;  %v314_v8 = vpack.c.bf16 %v310_v6, %v310_v6  ;;  %280 = vst.msk [vmem:[#allocation2 + $0x18] sm:$0xff] %vm276_vm1, %v902_v24  ;;  %vm402_vm2 = vcmp.le.s32.totalorder %v399_v27, %v395_v26 }
  0x11   : > { %v316_v9 = vpack.c.bf16 %v312_v7, %v312_v7  ;;  %v298_v10 = vld [vmem:[%s246_s22 + $0x8] sm:$0xff]  ;;  %v300_v11 = vld [vmem:[%s246_s22 + $0x18] sm:$0xff]  ;;  %v301_v14 = vmul.f32 0.35355338, %v297_v2  ;;  %v303_v15 = vmul.f32 0.35355338, %v299_v5 }
  0x12   : > { %v322_v12 = vsel %vm285_vm0, %v313_v3, 0  ;;  %v360_v13 = vsel %vm285_vm0, %v315_v4, 0  ;;  %v341_v16 = vsel %vm285_vm0, %v314_v8, 0  ;;  %v302_v18 = vmul.f32 0.35355338, %v298_v10  ;;  %283 = vst.msk [vmem:[#allocation3 + $0x10] sm:$0xff] %vm276_vm1, %v904_v45 }
  0x13   : > { %331 = vmatpush.bf16.xpose.msra.mxu0 %v322_v12  ;;  %369 = vmatpush.bf16.xpose.msra.mxu2 %v360_v13  ;;  %v379_v17 = vsel %vm285_vm0, %v316_v9, 0  ;;  %v304_v19 = vmul.f32 0.35355338, %v300_v11  ;;  %v305_v20 = vpack.c.bf16 %v301_v14, %v301_v14  ;;  %v307_v21 = vpack.c.bf16 %v303_v15, %v303_v15  ;;  %281 = vst.msk [vmem:[#allocation3] sm:$0xff] %vm276_vm1, %v904_v45  ;;  %v536_v62 = vld [vmem:[%s262_s25 + $0x10] sm:$0xff]  ;;  %v537_v1 = vld [vmem:[%s262_s25 + $0x18] sm:$0xff] }
  0x14   : > { %350 = vmatpush.bf16.xpose.msra.mxu1 %v341_v16  ;;  %388 = vmatpush.bf16.xpose.msra.mxu3 %v379_v17  ;;  %v306_v22 = vpack.c.bf16 %v302_v18, %v302_v18  ;;  %282 = vst.msk [vmem:[#allocation3 + $0x8] sm:$0xff] %vm276_vm1, %v904_v45  ;;  %v993_v46 = vld [vmem:[#allocation2] sm:$0xff]  ;;  %v540_v63 = vpack.c.bf16 %v536_v62, %v536_v62  ;;  %v535_v8 = vld [vmem:[%s262_s25 + $0x8] sm:$0xff] }
  0x15   : > { %v308_v23 = vpack.c.bf16 %v304_v19, %v304_v19  ;;  %284 = vst.msk [vmem:[#allocation3 + $0x18] sm:$0xff] %vm276_vm1, %v904_v45  ;;  %v1005_v52 = vld [vmem:[#allocation2 + $0x8] sm:$0xff]  ;;  %v541_v2 = vpack.c.bf16 %v537_v1, %v537_v1  ;;  %v534_v4 = vld [vmem:[%s262_s25] sm:$0xff]  ;;  %v539_v10 = vpack.c.bf16 %v535_v8, %v535_v8 }
  0x16   : > { %286 = vst.msk [vmem:[#allocation4] sm:$0xff] %vm285_vm0, %v904_v45  ;;  %v1003_v50 = vld [vmem:[#allocation2 + $0x10] sm:$0xff]  ;;  %v585_v0 = vsel %vm545_vm3, %v540_v63, 0  ;;  %v538_v5 = vpack.c.bf16 %v534_v4, %v534_v4 }
  0x17   : > { %287 = vst.msk [vmem:[#allocation4 + $0x8] sm:$0xff] %vm285_vm0, %v904_v45  ;;  %v1023_v58 = vld [vmem:[#allocation2 + $0x18] sm:$0xff]  ;;  %v604_v3 = vsel %vm545_vm3, %v541_v2, 0  ;;  %v566_v12 = vsel %vm545_vm3, %v539_v10, 0 }
  0x18   : > { %288 = vst.msk [vmem:[#allocation4 + $0x10] sm:$0xff] %vm285_vm0, %v904_v45  ;;  %v547_v6 = vsel %vm545_vm3, %v538_v5, 0 }
  0x19   : > { %289 = vst.msk [vmem:[#allocation4 + $0x18] sm:$0xff] %vm285_vm0, %v904_v45 }
  0x1a   : > { %810 = vmatmul.msk.bf16.vlgmr.msra.gmra.mxu0 %vm285_vm0, %v305_v20  ;;  %812 = vmatmul.msk.bf16.vlgmr.msra.gmra.mxu2 %vm285_vm0, %v307_v21 }
  0x1b   : > { %811 = vmatmul.msk.bf16.vlgmr.msra.gmra.mxu1 %vm285_vm0, %v306_v22  ;;  %813 = vmatmul.msk.bf16.vlgmr.msra.gmra.mxu3 %vm285_vm0, %v308_v23 }
  0x1c   : > { %594 = vmatpush.bf16.msrb.mxu2 %v585_v0  ;;  %613 = vmatpush.bf16.msrb.mxu3 %v604_v3 }
  0x1d   : > { %556 = vmatpush.bf16.msrb.mxu0 %v547_v6  ;;  %575 = vmatpush.bf16.msrb.mxu1 %v566_v12 }
  0x1e   : > { %v503_v12 = vld [vmem:[#allocation4 + $0x8] sm:$0xff] }
  0x1f   : > { %v504_v1 = vld [vmem:[#allocation4 + $0x10] sm:$0xff] }
  0x97   : > { %v333_v28 = vpop.f32.mrf.mxu0 }
  0x98   : > { %v966_v29 = vsel %vm402_vm2, %v333_v28, -1e+30  ;;  %v352_v30 = vpop.f32.mrf.mxu1 }
  0x99   : > { %v413_v31 = vsel %vm285_vm0, %v966_v29, -inf  ;;  %v971_v32 = vsel %vm402_vm2, %v352_v30, -1e+30 }
  0x9a   : > { %414 = vmax.xlane.f32.xlu1 %v413_v31  ;;  %v416_v38 = vsel %vm285_vm0, %v971_v32, -inf }
  0x9d   : > { %v371_v33 = vpop.f32.mrf.mxu2 }
  0x9e   : > { %v974_v34 = vsel %vm402_vm2, %v371_v33, -1e+30  ;;  %v390_v35 = vpop.f32.mrf.mxu3 }
  0x9f   : > { %v335_v36 = vpop.f32.mrf.mxu0  ;;  %v419_v37 = vsel %vm285_vm0, %v974_v34, -inf  ;;  %v981_v40 = vsel %vm402_vm2, %v390_v35, -1e+30 }
  0xa0   : > { %420 = vmax.xlane.f32.xlu0 %v419_v37  ;;  %v354_v39 = vpop.f32.mrf.mxu1  ;;  %v422_v41 = vsel %vm285_vm0, %v981_v40, -inf }
  0xa2   : > { %417 = vmax.xlane.f32.xlu1 %v416_v38 }
  0xa5   : > { %v373_v42 = vpop.f32.mrf.mxu2 }
  0xa6   : > { %v392_v43 = vpop.f32.mrf.mxu3 }
  0xa8   : > { %423 = vmax.xlane.f32.xlu0 %v422_v41  ;;  %v475_v41 = vld [vmem:[#allocation3 + $0x10] sm:$0xff] }
 0x10d   : > { %v415_v47 = vpop.xlane.xlu1 %414 }
 0x10e   : > { %v996_v48 = vmax.f32 %v993_v46, %v415_v47  ;;  %v473_v47 = vld [vmem:[#allocation3] sm:$0xff] }
 0x110   : > { %v429_v49 = vsub.f32 %v993_v46, %v996_v48  ;;  %627 = vst.msk [vmem:[#allocation2] sm:$0xff] %vm276_vm1, %v996_v48  ;;  %443 = vperm.xlu0 %852, %v996_v48  }
 0x113   : > { %v421_v51 = vpop.xlane.xlu0 %420 }
 0x114   : > { %v1008_v53 = vmax.f32 %v1003_v50, %v421_v51 }
 0x115   : > { %v418_v54 = vpop.xlane.xlu1 %417 }
 0x116   : > { %v431_v55 = vsub.f32 %v1003_v50, %v1008_v53  ;;  %629 = vst.msk [vmem:[#allocation2 + $0x10] sm:$0xff] %vm276_vm1, %v1008_v53  ;;  %v1015_v56 = vmax.f32 %v1005_v52, %v418_v54  ;;  %453 = vperm.xlu2 %851, %v1008_v53   ;;  %v474_v53 = vld [vmem:[#allocation3 + $0x8] sm:$0xff]  ;;  %v502_v54 = vld [vmem:[#allocation4] sm:$0xff] }
 0x118   : > { %v430_v57 = vsub.f32 %v1005_v52, %v1015_v56  ;;  %628 = vst.msk [vmem:[#allocation2 + $0x8] sm:$0xff] %vm276_vm1, %v1015_v56  ;;  %448 = vperm.xlu1 %853, %v1015_v56  }
 0x11a   : > { %v435_v35 = vmul.f32 1.442695, %v430_v57 }
 0x11b   : > { %v424_v59 = vpop.xlane.xlu0 %423 }
 0x11c   : > { %v1026_v60 = vmax.f32 %v1023_v58, %v424_v59 }
 0x11e   : > { %v432_v61 = vsub.f32 %v1023_v58, %v1026_v60  ;;  %630 = vst.msk [vmem:[#allocation2 + $0x18] sm:$0xff] %vm276_vm1, %v1026_v60  ;;  %458 = vperm.xlu2 %851, %v1026_v60  }
 0x170   : > { %v454_v7 = vpop.permute.xlu2 %453 }
 0x171   : > { %v463_v9 = vsub.f32 %v974_v34, %v454_v7  ;;  %v437_v34 = vmul.f32 1.442695, %v431_v55 }
 0x173   : > { %v469_v11 = vmul.f32 1.442695, %v463_v9 }
 0x175   : > { %854 = vpow2.f32 %v469_v11 }
 0x178   : > { %v459_v13 = vpop.permute.xlu2 %458 }
 0x179   : > { %v464_v14 = vsub.f32 %v981_v40, %v459_v13  ;;  %v439_v40 = vmul.f32 1.442695, %v432_v61 }
 0x17b   : > { %v855_v15 = vpop.eup %854  ;;  %v471_v16 = vmul.f32 1.442695, %v464_v14 }
 0x17c   : > { %v487_v17 = vsel %vm285_vm0, %v855_v15, 0.0  ;;  %v532_v18 = vpack.c.bf16 %v855_v15, %v855_v15 }
 0x17d   : > { %856 = vpow2.f32 %v471_v16  ;;  %488 = vadd.xlane.f32.xlu0 %v487_v17  ;;  %v476_v16 = vld [vmem:[#allocation3 + $0x18] sm:$0xff] }
 0x17e   : > { %816 = vmatmul.msk.bf16.vlgmr.msrb.gmra.mxu2 %vm285_vm0, %v532_v18 }
 0x182   : > { %v444_v19 = vpop.permute.xlu0 %443 }
 0x183   : > { %v857_v20 = vpop.eup %856  ;;  %v461_v21 = vsub.f32 %v966_v29, %v444_v19 }
 0x184   : > { %v533_v22 = vpack.c.bf16 %v857_v20, %v857_v20  ;;  %v490_v39 = vsel %vm285_vm0, %v857_v20, 0.0  ;;  %v505_v20 = vld [vmem:[#allocation4 + $0x18] sm:$0xff] }
 0x185   : > { %v465_v23 = vmul.f32 1.442695, %v461_v21 }
 0x186   : > { %817 = vmatmul.msk.bf16.vlgmr.msrb.gmra.mxu3 %vm285_vm0, %v533_v22 }
 0x187   : > { %858 = vpow2.f32 %v465_v23 }
 0x18a   : > { %v449_v24 = vpop.permute.xlu1 %448 }
 0x18b   : > { %v462_v25 = vsub.f32 %v971_v32, %v449_v24  ;;  %v433_v32 = vmul.f32 1.442695, %v429_v49 }
 0x18d   : > { %v859_v26 = vpop.eup %858  ;;  %v467_v27 = vmul.f32 1.442695, %v462_v25 }
 0x18e   : > { %v481_v28 = vsel %vm285_vm0, %v859_v26, 0.0  ;;  %v530_v30 = vpack.c.bf16 %v859_v26, %v859_v26 }
 0x18f   : > { %860 = vpow2.f32 %v467_v27  ;;  %482 = vadd.xlane.f32.xlu2 %v481_v28 }
 0x190   : > { %814 = vmatmul.msk.bf16.vlgmr.msrb.gmra.mxu0 %vm285_vm0, %v530_v30  ;;  %862 = vpow2.f32 %v433_v32 }
 0x191   : > { %864 = vpow2.f32 %v437_v34 }
 0x192   : > { %866 = vpow2.f32 %v435_v35 }
 0x193   : > { %868 = vpow2.f32 %v439_v40 }
 0x195   : > { %v861_v31 = vpop.eup %860 }
 0x196   : > { %v484_v29 = vsel %vm285_vm0, %v861_v31, 0.0  ;;  %v531_v33 = vpack.c.bf16 %v861_v31, %v861_v31  ;;  %v863_v36 = vpop.eup %862 }
 0x197   : > { %485 = vadd.xlane.f32.xlu1 %v484_v29  ;;  %v865_v37 = vpop.eup %864  ;;  %v477_v50 = vmul.f32 %v863_v36, %v473_v47 }
 0x198   : > { %815 = vmatmul.msk.bf16.vlgmr.msrb.gmra.mxu1 %vm285_vm0, %v531_v33  ;;  %v867_v38 = vpop.eup %866  ;;  %v479_v43 = vmul.f32 %v865_v37, %v475_v41 }
 0x199   : > { %v869_v42 = vpop.eup %868  ;;  %v478_v57 = vmul.f32 %v867_v38, %v474_v53 }
 0x19a   : > { %v480_v17 = vmul.f32 %v869_v42, %v476_v16 }
 0x1a7   : > { %508 = vperm.xlu2 %851, %v863_v36  }
 0x1af   : > { %518 = vperm.xlu2 %851, %v865_v37  }
 0x1b0   : > { %513 = vperm.xlu1 %853, %v867_v38  }
 0x1d8   : > { %491 = vadd.xlane.f32.xlu2 %v490_v39 }
 0x1f0   : > { %v489_v44 = vpop.xlane.xlu0 %488  ;;  %523 = vperm.xlu2 %851, %v869_v42  }
 0x1f1   : > { %v495_v45 = vadd.f32 %v489_v44, %v479_v43 }
 0x1f3   : > { %500 = vst.msk [vmem:[#allocation3 + $0x10] sm:$0xff] %vm276_vm1, %v495_v45 }
 0x1fa   : > { %v640_v46 = vld [vmem:[#allocation3 + $0x10] sm:$0xff] }
 0x1fb   : > { %870 = vrcp.f32 %v640_v46 }
 0x201   : > { %v871_v48 = vpop.eup %870  ;;  %v596_v49 = vpop.f32.mrf.mxu2 }
 0x202   : > { %v483_v51 = vpop.xlane.xlu2 %482  ;;  %658 = vperm.xlu1 %853, %v871_v48  }
 0x203   : > { %v493_v52 = vadd.f32 %v483_v51, %v477_v50 }
 0x205   : > { %498 = vst.msk [vmem:[#allocation3] sm:$0xff] %vm276_vm1, %v493_v52 }
 0x209   : > { %v598_v55 = vpop.f32.mrf.mxu2  ;;  %v615_v56 = vpop.f32.mrf.mxu3 }
 0x20a   : > { %v509_v58 = vpop.permute.xlu2 %508  ;;  %v486_v59 = vpop.xlane.xlu1 %485 }
 0x20b   : > { %v526_v60 = vmul.f32 %v509_v58, %v502_v54  ;;  %v494_v61 = vadd.f32 %v486_v59, %v478_v57 }
 0x20c   : > { %v638_v62 = vld [vmem:[#allocation3] sm:$0xff] }
 0x20d   : > { %499 = vst.msk [vmem:[#allocation3 + $0x8] sm:$0xff] %vm276_vm1, %v494_v61  ;;  %v558_v63 = vpop.f32.mrf.mxu0  ;;  %872 = vrcp.f32 %v638_v62 }
 0x20e   : > { %v619_v0 = vadd.f32 %v558_v63, %v526_v60 }
 0x210   : > { %623 = vst.msk [vmem:[#allocation4] sm:$0xff] %vm285_vm0, %v619_v0 }
 0x211   : > { %v617_v2 = vpop.f32.mrf.mxu3 }
 0x212   : > { %v519_v3 = vpop.permute.xlu2 %518 }
 0x213   : > { %v873_v4 = vpop.eup %872  ;;  %v528_v5 = vmul.f32 %v519_v3, %v504_v1 }
 0x214   : > { %648 = vperm.xlu0 %852, %v873_v4   ;;  %v639_v6 = vld [vmem:[#allocation3 + $0x8] sm:$0xff] }
 0x215   : > { %v621_v7 = vadd.f32 %v596_v49, %v528_v5  ;;  %v560_v8 = vpop.f32.mrf.mxu0  ;;  %v577_v9 = vpop.f32.mrf.mxu1  ;;  %874 = vrcp.f32 %v639_v6 }
 0x217   : > { %625 = vst.msk [vmem:[#allocation4 + $0x10] sm:$0xff] %vm285_vm0, %v621_v7  ;;  %v634_v32 = vld [vmem:[#allocation4] sm:$0xff] }
 0x21b   : > { %v875_v10 = vpop.eup %874 }
 0x21c   : > { %653 = vperm.xlu2 %851, %v875_v10  }
 0x21d   : > { %v579_v11 = vpop.f32.mrf.mxu1 }
 0x21e   : > { %v636_v26 = vld [vmem:[#allocation4 + $0x10] sm:$0xff] }
 0x222   : > { %v514_v13 = vpop.permute.xlu1 %513 }
 0x223   : > { %v527_v14 = vmul.f32 %v514_v13, %v503_v12 }
 0x225   : > { %v620_v15 = vadd.f32 %v577_v9, %v527_v14 }
 0x227   : > { %624 = vst.msk [vmem:[#allocation4 + $0x8] sm:$0xff] %vm285_vm0, %v620_v15 }
 0x22e   : > { %v635_v30 = vld [vmem:[#allocation4 + $0x8] sm:$0xff] }
 0x24b   : > { %v492_v18 = vpop.xlane.xlu2 %491 }
 0x24c   : > { %v496_v19 = vadd.f32 %v492_v18, %v480_v17 }
 0x24e   : > { %501 = vst.msk [vmem:[#allocation3 + $0x18] sm:$0xff] %vm276_vm1, %v496_v19 }
 0x253   : > { %v524_v21 = vpop.permute.xlu2 %523 }
 0x254   : > { %v529_v22 = vmul.f32 %v524_v21, %v505_v20 }
 0x255   : > { %v641_v23 = vld [vmem:[#allocation3 + $0x18] sm:$0xff] }
 0x256   : > { %v622_v24 = vadd.f32 %v615_v56, %v529_v22  ;;  %876 = vrcp.f32 %v641_v23 }
 0x258   : > { %626 = vst.msk [vmem:[#allocation4 + $0x18] sm:$0xff] %vm285_vm0, %v622_v24 }
 0x25c   : > { %v877_v25 = vpop.eup %876 }
 0x25d   : > { %663 = vperm.xlu2 %851, %v877_v25  }
 0x25f   : > { %v637_v35 = vld [vmem:[#allocation4 + $0x18] sm:$0xff] }
 0x274   : > { %v659_v27 = vpop.permute.xlu1 %658 }
 0x275   : > { %v668_v28 = vmul.f32 %v659_v27, %v636_v26 }
 0x276   : > { %v654_v31 = vpop.permute.xlu2 %653 }
 0x277   : > { %673 = vst.msk [vmem:[%s270_s28 + $0x10] sm:$0xff] %vm285_vm0, %v668_v28  ;;  %v667_v29 = vmul.f32 %v654_v31, %v635_v30 }
 0x279   : > { %672 = vst.msk [vmem:[%s270_s28 + $0x8] sm:$0xff] %vm285_vm0, %v667_v29 }
 0x286   : > { %v649_v33 = vpop.permute.xlu0 %648 }
 0x287   : > { %v666_v34 = vmul.f32 %v649_v33, %v634_v32 }
 0x289   : > { %671 = vst.msk [vmem:[%s270_s28] sm:$0xff] %vm285_vm0, %v666_v34 }
 0x2b7   : > { %v664_v36 = vpop.permute.xlu2 %663 }
 0x2b8   : > { %v669_v37 = vmul.f32 %v664_v36, %v637_v35 }
 0x2ba   : > { %674 = vst.msk [vmem:[%s270_s28 + $0x18] sm:$0xff] %vm285_vm0, %v669_v37 }
 0x2bb PF: > { %s13_s14 = sadd.s32 1, %s900_s14   ;;  %s1094_s12 = smov %s896_s13 }
 0x2bc   : > { %p10_p5 = scmp.ge.s32.totalorder %s13_s14, 4   ;;  %s1095_s13 = smov %s1097_s15 }
 0x2be   :  { %12 = sbr.rel (!%p10_p5) target bundleno = 2 (0x2), region = 80 }

// kernel: deepspeed_transformer_inference.11
= control target key start
LH: loop header
LB: loop body
LE: loop exit
PB: predicated region body
PF: predicated region fallthrough
CT: control target
= control target key end

     0   :  { %vm16_vm0 = vcmask 261120   ;;  %v95_v4 = vmov 32.0   ;;  %s140_s0 = inlined_call_operand.vmem [shape: f32[16,32], index: 0, kind: input, shape index: {}]   ;;  %s141_s1 = inlined_call_operand.vmem [shape: f32[1,32], index: 1, kind: input, shape index: {}]   ;;  %s142_s2 = inlined_call_operand.vmem [shape: f32[1,32], index: 2, kind: input, shape index: {}]   ;;  %s143_s3 = inlined_call_operand.vmem [shape: f32[16,32], index: 3, kind: output, shape index: {}]  }
   0x1   :  { %v14_v0 = vld [vmem:[%s140_s0] sm:$0xff]  ;;  %v15_v2 = vld [vmem:[%s140_s0 + $0x8] sm:$0xff]  ;;  %89 = vrcp.f32 %v95_v4 }
   0x2   :  { %v17_v1 = vsel %vm16_vm0, %v14_v0, 0.0  ;;  %v20_v3 = vsel %vm16_vm0, %v15_v2, 0.0  ;;  %v87_v35 = vld [vmem:[%s141_s1] ss:$0 sm:$0xff] }
   0x3   :  { %18 = vadd.xlane.f32.xlu0 %v17_v1  ;;  %v88_v38 = vld [vmem:[%s142_s2] ss:$0 sm:$0xff] }
   0x7   :  { %v90_v5 = vpop.eup %89 }
   0x8   :  { %v24_v6 = vmul.f32 32.0, %v90_v5  ;;  %vm28_vm1 = vweird.f32 %v90_v5 }
   0xa   :  { %v25_v7 = vsub.f32 1.0, %v24_v6 }
   0xb   :  { %21 = vadd.xlane.f32.xlu0 %v20_v3 }
   0xc   :  { %v26_v8 = vmul.f32 %v90_v5, %v25_v7 }
   0xe   :  { %v27_v9 = vadd.f32 %v90_v5, %v26_v8 }
  0x10   :  { %v29_v10 = vsel %vm28_vm1, %v90_v5, %v27_v9 }
  0x76   :  { %v19_v11 = vpop.xlane.xlu0 %18 }
  0x77   :  { %v30_v12 = vmul.f32 %v29_v10, %v19_v11 }
  0x79   :  { %v32_v13 = vsub.f32 %v14_v0, %v30_v12 }
  0x7b   :  { %v34_v14 = vmul.f32 %v32_v13, %v32_v13 }
  0x7d   :  { %v36_v15 = vsel %vm16_vm0, %v34_v14, 0.0 }
  0x7e   :  { %37 = vadd.xlane.f32.xlu1 %v36_v15  ;;  %v22_v16 = vpop.xlane.xlu0 %21 }
  0x7f   :  { %v31_v17 = vmul.f32 %v29_v10, %v22_v16 }
  0x81   :  { %v33_v18 = vsub.f32 %v15_v2, %v31_v17 }
  0x83   :  { %v35_v19 = vmul.f32 %v33_v18, %v33_v18 }
  0x85   :  { %v39_v20 = vsel %vm16_vm0, %v35_v19, 0.0 }
  0x86   :  { %40 = vadd.xlane.f32.xlu1 %v39_v20 }
  0xf1   :  { %v38_v21 = vpop.xlane.xlu1 %37 }
  0xf2   :  { %v42_v22 = vmul.f32 %v38_v21, %v29_v10 }
  0xf4   :  { %v44_v23 = vadd.f32 1e-12, %v42_v22 }
  0xf6   :  { %91 = vrsqrt.f32 %v44_v23  ;;  %vm52_vm3 = vweird.f32 %v44_v23 }
  0xf9   :  { %v41_v24 = vpop.xlane.xlu1 %40 }
  0xfa   :  { %v43_v25 = vmul.f32 %v41_v24, %v29_v10 }
  0xfc   :  { %v92_v26 = vpop.eup %91  ;;  %v45_v27 = vadd.f32 1e-12, %v43_v25 }
  0xfd   :  { %v47_v28 = vmul.f32 %v92_v26, %v44_v23  ;;  %vm53_vm2 = vweird.f32 %v92_v26 }
  0xfe   :  { %93 = vrsqrt.f32 %v45_v27  ;;  %vm54_vm4 = vmor %vm52_vm3, %vm53_vm2  ;;  %vm62_vm6 = vweird.f32 %v45_v27 }
  0xff   :  { %v48_v29 = vmul.f32 %v92_v26, %v47_v28 }
 0x101   :  { %v49_v30 = vmul.f32 0.5, %v48_v29 }
 0x103   :  { %v50_v31 = vsub.f32 1.5, %v49_v30 }
 0x104   :  { %v94_v32 = vpop.eup %93 }
 0x105   :  { %v51_v33 = vmul.f32 %v92_v26, %v50_v31  ;;  %v57_v34 = vmul.f32 %v94_v32, %v45_v27  ;;  %vm63_vm5 = vweird.f32 %v94_v32 }
 0x106   :  { %vm64_vm7 = vmor %vm62_vm6, %vm63_vm5 }
 0x107   :  { %v55_v36 = vsel %vm54_vm4, %v92_v26, %v51_v33  ;;  %v58_v37 = vmul.f32 %v94_v32, %v57_v34 }
 0x108   :  { %v66_v39 = vmul.f32 %v55_v36, %v32_v13 }
 0x109   :  { %v59_v40 = vmul.f32 0.5, %v58_v37 }
 0x10a   :  { %v72_v41 = vmul.f32 %v87_v35, %v66_v39 }
 0x10b   :  { %v60_v42 = vsub.f32 1.5, %v59_v40 }
 0x10c   :  { %v78_v43 = vadd.f32 %v88_v38, %v72_v41 }
 0x10d   :  { %v61_v44 = vmul.f32 %v94_v32, %v60_v42 }
 0x10e   :  { %80 = vst.msk [vmem:[%s143_s3] sm:$0xff] %vm16_vm0, %v78_v43 }
 0x10f   :  { %v65_v45 = vsel %vm64_vm7, %v94_v32, %v61_v44 }
 0x110   :  { %v67_v46 = vmul.f32 %v65_v45, %v33_v18 }
 0x112   :  { %v73_v47 = vmul.f32 %v87_v35, %v67_v46 }
 0x114   :  { %v79_v48 = vadd.f32 %v88_v38, %v73_v47 }
 0x116   :  { %81 = vst.msk [vmem:[%s143_s3 + $0x8] sm:$0xff] %vm16_vm0, %v79_v48 }

// kernel: deepspeed_transformer_inference.10
= control target key start
LH: loop header
LB: loop body
LE: loop exit
PB: predicated region body
PF: predicated region fallthrough
CT: control target
= control target key end

     0   :  { %vm22_vm0 = vcmask 261120   ;;  %v102_v1 = vmov 0.0   ;;  %s162_s1 = inlined_call_operand.vmem [shape: bf16[32,32], index: 1, kind: input, shape index: {}]   ;;  %s163_s0 = inlined_call_operand.vmem [shape: f32[16,32], index: 0, kind: input, shape index: {}]   ;;  %s164_s2 = inlined_call_operand.vmem [shape: f32[1,32], index: 2, kind: input, shape index: {}]   ;;  %s165_s3 = inlined_call_operand.vmem [shape: f32[16,32], index: 3, kind: input, shape index: {}]   ;;  %s166_s4 = inlined_call_operand.vmem [shape: f32[16,32], index: 4, kind: output, shape index: {}]  }
   0x1   :  { %v99_v0 = vld [vmem:[%s162_s1 + $0x8] sm:$0xff]  ;;  %23 = vst.msk [vmem:[#allocation2] sm:$0xff] %vm22_vm0, %v102_v1  ;;  %v98_v2 = vld [vmem:[%s162_s1] sm:$0xff] }
   0x2   :  { %24 = vst.msk [vmem:[#allocation2 + $0x8] sm:$0xff] %vm22_vm0, %v102_v1  ;;  %56 = vmatpush.bf16.msra.mxu0 %v99_v0  ;;  %v27_v3 = vld [vmem:[%s163_s0] sm:$0xff]  ;;  %v28_v4 = vld [vmem:[%s163_s0 + $0x8] sm:$0xff] }
   0x3   :  { %v29_v5 = vpack.c.bf16 %v28_v4, %v27_v3  ;;  %v101_v10 = vld [vmem:[%s164_s2] ss:$0 sm:$0xff]  ;;  %v80_v18 = vld [vmem:[%s165_s3 + $0x8] sm:$0xff] }
   0x4   :  { %v79_v14 = vld [vmem:[%s165_s3] sm:$0xff] }
   0x6   :  { %57 = vmatpush.bf16.msra.mxu0 %v98_v2 }
   0x8   :  { %v25_v6 = vld [vmem:[#allocation2] sm:$0xff] }
   0x9   :  { %97 = vmatmul.msk.bf16.vlgmr.msra.gmra.mxu0 %vm22_vm0, %v29_v5  ;;  %v26_v9 = vld [vmem:[#allocation2 + $0x8] sm:$0xff] }
  0x86   :  { %v59_v7 = vpop.f32.mrf.mxu0 }
  0x87   :  { %v64_v8 = vadd.f32 %v59_v7, %v25_v6 }
  0x89   :  { %66 = vst.msk [vmem:[#allocation2] sm:$0xff] %vm22_vm0, %v64_v8 }
  0x8e   :  { %v61_v11 = vpop.f32.mrf.mxu0 }
  0x8f   :  { %v65_v12 = vadd.f32 %v61_v11, %v26_v9 }
  0x90   :  { %v71_v13 = vld [vmem:[#allocation2] sm:$0xff] }
  0x91   :  { %v77_v15 = vadd.f32 %v101_v10, %v71_v13  ;;  %67 = vst.msk [vmem:[#allocation2 + $0x8] sm:$0xff] %vm22_vm0, %v65_v12 }
  0x93   :  { %v81_v16 = vadd.f32 %v79_v14, %v77_v15 }
  0x95   :  { %83 = vst.msk [vmem:[%s166_s4] sm:$0xff] %vm22_vm0, %v81_v16 }
  0x98   :  { %v72_v17 = vld [vmem:[#allocation2 + $0x8] sm:$0xff] }
  0x99   :  { %v78_v19 = vadd.f32 %v101_v10, %v72_v17 }
  0x9b   :  { %v82_v20 = vadd.f32 %v80_v18, %v78_v19 }
  0x9d   :  { %84 = vst.msk [vmem:[%s166_s4 + $0x8] sm:$0xff] %vm22_vm0, %v82_v20 }

// kernel: deepspeed_transformer_inference.12
= control target key start
LH: loop header
LB: loop body
LE: loop exit
PB: predicated region body
PF: predicated region fallthrough
CT: control target
= control target key end

     0   :  { %vm42_vm0 = vcmask 261120   ;;  %s156_s1 = inlined_call_operand.vmem [shape: bf16[32,128], index: 1, kind: input, shape index: {}]   ;;  %s157_s0 = inlined_call_operand.vmem [shape: f32[16,32], index: 0, kind: input, shape index: {}]   ;;  %s158_s2 = inlined_call_operand.vmem [shape: f32[1,128], index: 2, kind: input, shape index: {}]   ;;  %s159_s3 = inlined_call_operand.vmem [shape: f32[16,128], index: 3, kind: output, shape index: {}]  }
   0x1   :  { %v109_v0 = vld [vmem:[%s156_s1 + $0x8] sm:$0xff]  ;;  %v108_v1 = vld [vmem:[%s156_s1] sm:$0xff] }
   0x2   :  { %52 = vmatpush.bf16.msra.mxu0 %v109_v0  ;;  %v23_v2 = vld [vmem:[%s157_s0] sm:$0xff]  ;;  %v24_v3 = vld [vmem:[%s157_s0 + $0x8] sm:$0xff] }
   0x3   :  { %v25_v4 = vpack.c.bf16 %v24_v3, %v23_v2  ;;  %v110_v5 = vld [vmem:[%s158_s2] ss:$0 sm:$0xff] }
   0x6   :  { %53 = vmatpush.bf16.msra.mxu0 %v108_v1 }
   0x9   :  { %107 = vmatmul.msk.bf16.vlgmr.msra.gmra.mxu0 %vm42_vm0, %v25_v4 }
  0x86   :  { %v55_v6 = vpop.f32.mrf.mxu0 }
  0x87   :  { %v73_v7 = vadd.f32 %v110_v5, %v55_v6 }
  0x89   :  { %v77_v8 = vmul.f32 0.044715, %v73_v7  ;;  %v75_v21 = vmul.f32 0.5, %v73_v7 }
  0x8b   :  { %v79_v9 = vmul.f32 %v77_v8, %v73_v7 }
  0x8d   :  { %v81_v10 = vmul.f32 %v79_v9, %v73_v7 }
  0x8e   :  { %v57_v11 = vpop.f32.mrf.mxu0 }
  0x8f   :  { %v83_v12 = vadd.f32 %v81_v10, %v73_v7  ;;  %v74_v13 = vadd.f32 %v110_v5, %v57_v11 }
  0x91   :  { %v85_v14 = vmul.f32 0.7978846, %v83_v12  ;;  %v78_v15 = vmul.f32 0.044715, %v74_v13  ;;  %v76_v25 = vmul.f32 0.5, %v74_v13 }
  0x93   :  { %111 = vtanh.f32 %v85_v14  ;;  %v80_v16 = vmul.f32 %v78_v15, %v74_v13 }
  0x95   :  { %v82_v17 = vmul.f32 %v80_v16, %v74_v13 }
  0x97   :  { %v84_v18 = vadd.f32 %v82_v17, %v74_v13 }
  0x99   :  { %v112_v19 = vpop.eup %111  ;;  %v86_v20 = vmul.f32 0.7978846, %v84_v18 }
  0x9a   :  { %v89_v22 = vadd.f32 1.0, %v112_v19 }
  0x9b   :  { %113 = vtanh.f32 %v86_v20 }
  0x9c   :  { %v91_v23 = vmul.f32 %v89_v22, %v75_v21 }
  0x9e   :  { %93 = vst [vmem:[%s159_s3] sm:$0xff] %v91_v23 }
  0xa1   :  { %v114_v24 = vpop.eup %113 }
  0xa2   :  { %v90_v26 = vadd.f32 1.0, %v114_v24 }
  0xa4   :  { %v92_v27 = vmul.f32 %v90_v26, %v76_v25 }
  0xa6   :  { %94 = vst [vmem:[%s159_s3 + $0x8] sm:$0xff] %v92_v27 }

// kernel: deepspeed_transformer_inference.13
= control target key start
LH: loop header
LB: loop body
LE: loop exit
PB: predicated region body
PF: predicated region fallthrough
CT: control target
= control target key end

     0   :  { %vm22_vm0 = vcmask 261120   ;;  %v219_v2 = vmov 0.0   ;;  %s296_s0 = inlined_call_operand.vmem [shape: f32[16,128], index: 0, kind: input, shape index: {}]   ;;  %s297_s1 = inlined_call_operand.vmem [shape: bf16[128,32], index: 1, kind: input, shape index: {}]   ;;  %s298_s2 = inlined_call_operand.vmem [shape: f32[1,32], index: 2, kind: input, shape index: {}]   ;;  %s299_s3 = inlined_call_operand.vmem [shape: f32[16,32], index: 3, kind: input, shape index: {}]   ;;  %s300_s4 = inlined_call_operand.hbm [shape: f32[16,32], index: 4, kind: output, shape index: {}]  }
   0x1   :  { %v187_v0 = vld [vmem:[%s297_s1 + $0x38] sm:$0xff]  ;;  %v186_v1 = vld [vmem:[%s297_s1 + $0x30] sm:$0xff]  ;;  %23 = vst.msk [vmem:[#allocation2] sm:$0xff] %vm22_vm0, %v219_v2 }
   0x2   :  { %94 = vmatpush.bf16.msra.mxu0 %v187_v0  ;;  %24 = vst.msk [vmem:[#allocation2 + $0x8] sm:$0xff] %vm22_vm0, %v219_v2 }
   0x3   :  { %9 = vsyncpa [#allocation4], 0  ;;  %v185_v3 = vld [vmem:[%s297_s1 + $0x28] sm:$0xff]  ;;  %v184_v4 = vld [vmem:[%s297_s1 + $0x20] sm:$0xff]  ;;  %s136_s15 = sshll.u32 %s300_s4, 4  ;;  %s221_s17 = smov 128   ;;  %s137_s15 = int_to_ptr.hbm [resolvable:$true] %s136_s15 }
   0x4   :  { %v183_v5 = vld [vmem:[%s297_s1 + $0x18] sm:$0xff]  ;;  %v182_v6 = vld [vmem:[%s297_s1 + $0x10] sm:$0xff]  ;;  %v181_v7 = vld [vmem:[%s297_s1 + $0x8] sm:$0xff]  ;;  %s222_s18 = smov 8  }
   0x5   :  { %v180_v8 = vld [vmem:[%s297_s1] sm:$0xff]  ;;  %v28_v10 = vld [vmem:[%s296_s0 + $0x8] sm:$0xff] }
   0x6   :  { %95 = vmatpush.bf16.msra.mxu0 %v186_v1  ;;  %v27_v9 = vld [vmem:[%s296_s0] sm:$0xff]  ;;  %s220_s0 = smov [#allocation3]   ;;  %v125_v24 = vld [vmem:[%s299_s3 + $0x8] sm:$0xff] }
   0x7   :  { %v29_v11 = vpack.c.bf16 %v28_v10, %v27_v9  ;;  %v192_v16 = vld [vmem:[%s298_s2] ss:$0 sm:$0xff]  ;;  %s134_s12 = sshll.u32 %s220_s0, 4  ;;  %s135_s12 = int_to_ptr.vmem [resolvable:$true] %s134_s12 }
   0x8   :  { %v25_v12 = vld [vmem:[#allocation2] sm:$0xff] }
   0x9   :  { %v26_v15 = vld [vmem:[#allocation2 + $0x8] sm:$0xff]  ;;  %v124_v20 = vld [vmem:[%s299_s3] sm:$0xff] }
   0xa   :  { %96 = vmatpush.bf16.msra.mxu0 %v185_v3 }
   0xe   :  { %97 = vmatpush.bf16.msra.mxu0 %v184_v4 }
  0x12   :  { %98 = vmatpush.bf16.msra.mxu0 %v183_v5 }
  0x16   :  { %99 = vmatpush.bf16.msra.mxu0 %v182_v6 }
  0x1a   :  { %100 = vmatpush.bf16.msra.mxu0 %v181_v7 }
  0x1e   :  { %101 = vmatpush.bf16.msra.mxu0 %v180_v8 }
  0x21   :  { %102 = vmatmul.bf16.vlgmr.msra.gmra.mxu0 %v29_v11 }
  0x9e   :  { %v103_v13 = vpop.f32.mrf.mxu0 }
  0x9f   :  { %v108_v14 = vadd.f32 %v103_v13, %v25_v12 }
  0xa1   :  { %111 = vst.msk [vmem:[#allocation2] sm:$0xff] %vm22_vm0, %v108_v14 }
  0xa6   :  { %v105_v17 = vpop.f32.mrf.mxu0 }
  0xa7   :  { %v109_v18 = vadd.f32 %v105_v17, %v26_v15 }
  0xa8   :  { %v116_v19 = vld [vmem:[#allocation2] sm:$0xff] }
  0xa9   :  { %112 = vst.msk [vmem:[#allocation2 + $0x8] sm:$0xff] %vm22_vm0, %v109_v18  ;;  %v122_v21 = vadd.f32 %v192_v16, %v116_v19 }
  0xab   :  { %v126_v22 = vadd.f32 %v124_v20, %v122_v21 }
  0xad   :  { %128 = vst.msk [vmem:[#allocation3] sm:$0xff] %vm22_vm0, %v126_v22 }
  0xb0   :  { %v117_v23 = vld [vmem:[#allocation2 + $0x8] sm:$0xff] }
  0xb1   :  { %v123_v25 = vadd.f32 %v192_v16, %v117_v23 }
  0xb3   :  { %v127_v26 = vadd.f32 %v125_v24, %v123_v25 }
  0xb5   :  { %129 = vst.msk [vmem:[#allocation3 + $0x8] sm:$0xff] %vm22_vm0, %v127_v26 }
  0xb6   :  { %142 = dma.vmem_to_hbm [thread:$0]  %s135_s12, 256, %s137_s15, [#allocation4], %s221_s17, %s221_s17, %s222_s18  }
  0xb7   :  { %217 = dma.done.wait [#allocation4], 256  }
  0xb8   :  { %218 = vsyncadd [#allocation4], 4294967040 }
  0xb9   :  { %147 = vsyncpa [#allocation4], 1 }

</bundles_post_ra>
